<compile_context>
chip_gen: v5e
topology: v5e:2x2
jax: 0.10.0
libtpu: 0.0.40
codegen_flags: <defaults>
</compile_context>

<pallas_src>
import jax
import jax.numpy as jnp
from jax.experimental import pallas as pl
from jax.experimental.pallas import tpu as pltpu

ACTION_SIZE = 18
HIDDEN = 128
BN_EPS = 1e-5


# --------------------------------------------------------------- kernels ----

def _conv_trunk_kernel(p_ref, w1_ref, b1_ref, w2_ref, b2_ref, o_ref):
    # p_ref: (N*25, 1024) conv1 patches grouped per conv2 tap (kh,kw,dy,dx)
    # w1_ref: (1024, 64) block-diagonal folded conv1+BN1 weight
    # w2_ref: (64, 16)   folded conv2+BN2 weight (rows ordered (kh,kw,c1))
    y1 = jnp.dot(p_ref[...], w1_ref[...], preferred_element_type=jnp.float32)
    y1 = jnp.maximum(y1 + b1_ref[...], 0.0)            # conv1 + BN1 + ReLU
    y2 = jnp.dot(y1, w2_ref[...], preferred_element_type=jnp.float32)
    o_ref[...] = jnp.maximum(y2 + b2_ref[...], 0.0)     # conv2 + BN2 + ReLU


def _mlp_lstm_head_kernel(x_ref, h_ref, c_ref,
                          wlin_ref, blin_ref,
                          wlstm_ref, blstm_ref,
                          wv1_ref, bv1_ref, wv2_ref, bv2_ref,
                          wa1_ref, ba1_ref, wa2_ref, ba2_ref,
                          q_ref, h_out_ref, c_out_ref):
    # linear: 400 -> 128 (no activation, matching the reference module)
    x = jnp.dot(x_ref[...], wlin_ref[...],
                preferred_element_type=jnp.float32) + blin_ref[...]

    # single-step LSTM cell; one MXU matmul on concat([x, h]) @ [[Wih^T],[Whh^T]]
    xh = jnp.concatenate([x, h_ref[...]], axis=1)                  # (N, 256)
    gates = jnp.dot(xh, wlstm_ref[...],
                    preferred_element_type=jnp.float32) + blstm_ref[...]
    i = jax.nn.sigmoid(gates[:, 0 * HIDDEN:1 * HIDDEN])
    f = jax.nn.sigmoid(gates[:, 1 * HIDDEN:2 * HIDDEN])
    g = jnp.tanh(gates[:, 2 * HIDDEN:3 * HIDDEN])
    o = jax.nn.sigmoid(gates[:, 3 * HIDDEN:4 * HIDDEN])
    c_new = f * c_ref[...] + i * g
    h_new = o * jnp.tanh(c_new)
    h_out_ref[...] = h_new
    c_out_ref[...] = c_new

    # dueling head: value + (advantage - advantage.mean())  (global mean,
    # faithful to torch `advantage.mean()` with no dim argument)
    v = jnp.maximum(jnp.dot(h_new, wv1_ref[...],
                            preferred_element_type=jnp.float32) + bv1_ref[...], 0.0)
    v = jnp.dot(v, wv2_ref[...], preferred_element_type=jnp.float32) + bv2_ref[...]
    a = jnp.maximum(jnp.dot(h_new, wa1_ref[...],
                            preferred_element_type=jnp.float32) + ba1_ref[...], 0.0)
    a = jnp.dot(a, wa2_ref[...], preferred_element_type=jnp.float32) + ba2_ref[...]
    q_ref[...] = v + (a - jnp.mean(a))


# ------------------------------------------------------------- call glue ----

def _vmem_spec():
    return pl.BlockSpec(memory_space=pltpu.MemorySpace.VMEM)


def _pcall(kernel, out_shapes, *args):
    multi = isinstance(out_shapes, (tuple, list))
    out_specs = (tuple(_vmem_spec() for _ in out_shapes) if multi
                 else _vmem_spec())
    return pl.pallas_call(
        kernel,
        out_shape=tuple(out_shapes) if multi else out_shapes,
        in_specs=[_vmem_spec() for _ in args],
        out_specs=out_specs,
    )(*args)


def _im2col_wide(x):
    # x: (N, 1, 84, 84) NCHW -> (N*25, 1024)
    # row = (n, oh2, ow2)  [conv2 output position]
    # col = (kh, kw, dy, dx) = kh*256 + kw*64 + dy*8 + dx
    #   where (kh, kw) is the conv2 tap and (dy, dx) the conv1 8x8 tap.
    n = x.shape[0]
    x2 = x[:, 0]                                                    # (N, 84, 84)
    idx = (jnp.arange(20) * 4)[:, None] + jnp.arange(8)[None, :]    # (20, 8)
    t = x2[:, idx, :]                         # (N, 20, 8, 84)   (n, oh1, dy, W)
    t = t[:, :, :, idx]                       # (N, 20, 8, 20, 8) (n, oh1, dy, ow1, dx)
    t = t.reshape(n, 5, 4, 8, 5, 4, 8)        # (n, oh2, kh, dy, ow2, kw, dx)
    t = t.transpose(0, 1, 4, 2, 5, 3, 6)      # (n, oh2, ow2, kh, kw, dy, dx)
    return t.reshape(n * 25, 1024)


# ------------------------------------------------------------ parameters ----

def init_params(key, action_size=ACTION_SIZE):
    ks = jax.random.split(key, 24)

    def nrm(k, shape, s=0.05):
        return jax.random.normal(k, shape, jnp.float32) * s

    p = {}
    # conv1: Conv2d(1, 4, kernel=8, stride=4) + BatchNorm2d(4)
    p["conv1_w"] = nrm(ks[0], (4, 1, 8, 8))
    p["conv1_b"] = nrm(ks[1], (4,))
    p["bn1_gamma"] = 1.0 + nrm(ks[2], (4,))
    p["bn1_beta"] = nrm(ks[3], (4,))
    p["bn1_mean"] = jnp.zeros((4,), jnp.float32)
    p["bn1_var"] = jnp.ones((4,), jnp.float32)
    # conv2: Conv2d(4, 16, kernel=4, stride=4) + BatchNorm2d(16)
    p["conv2_w"] = nrm(ks[4], (16, 4, 4, 4))
    p["conv2_b"] = nrm(ks[5], (16,))
    p["bn2_gamma"] = 1.0 + nrm(ks[6], (16,))
    p["bn2_beta"] = nrm(ks[7], (16,))
    p["bn2_mean"] = jnp.zeros((16,), jnp.float32)
    p["bn2_var"] = jnp.ones((16,), jnp.float32)
    # linear: Linear(16*5*5, 128)
    p["lin_w"] = nrm(ks[8], (HIDDEN, 400))
    p["lin_b"] = nrm(ks[9], (HIDDEN,))
    # LSTM(128, 128, 1)  -- torch gate order (i, f, g, o)
    p["lstm_wih"] = nrm(ks[10], (4 * HIDDEN, HIDDEN))
    p["lstm_whh"] = nrm(ks[11], (4 * HIDDEN, HIDDEN))
    p["lstm_bih"] = nrm(ks[12], (4 * HIDDEN,))
    p["lstm_bhh"] = nrm(ks[13], (4 * HIDDEN,))
    # value stream: Linear(128,64) -> ReLU -> Linear(64,1)
    p["v1_w"] = nrm(ks[14], (64, HIDDEN))
    p["v1_b"] = nrm(ks[15], (64,))
    p["v2_w"] = nrm(ks[16], (1, 64))
    p["v2_b"] = nrm(ks[17], (1,))
    # advantage stream: Linear(128,64) -> ReLU -> Linear(64,actionSize)
    p["a1_w"] = nrm(ks[18], (64, HIDDEN))
    p["a1_b"] = nrm(ks[19], (64,))
    p["a2_w"] = nrm(ks[20], (action_size, 64))
    p["a2_b"] = nrm(ks[21], (action_size,))
    return p


def fold_params(p):
    """Pre-fold BN into conv scale/bias and pre-transpose/pack every weight.

    Called ONCE outside jit so no per-forward transpose/elementwise ops remain
    on the critical path.
    """
    # conv1 + BN1 -> block-diagonal weight so the conv1 output is emitted
    # directly in conv2-patch-major layout (cols ordered (kh, kw, c1)).
    scale1 = p["bn1_gamma"] * jax.lax.rsqrt(p["bn1_var"] + BN_EPS)
    wk = (p["conv1_w"][:, 0] * scale1[:, None, None]).reshape(4, 64).T   # (64, 4)
    w1 = jnp.kron(jnp.eye(16, dtype=wk.dtype), wk)                        # (1024, 64)
    b1f = (p["conv1_b"] - p["bn1_mean"]) * scale1 + p["bn1_beta"]
    b1 = jnp.tile(b1f, 16).reshape(1, 64)

    # conv2 + BN2, rows reordered to (kh, kw, c1) to match the kernel-A layout
    scale2 = p["bn2_gamma"] * jax.lax.rsqrt(p["bn2_var"] + BN_EPS)
    w2 = (p["conv2_w"] * scale2[:, None, None, None]
          ).transpose(2, 3, 1, 0).reshape(64, 16)                         # (64, 16)
    b2 = ((p["conv2_b"] - p["bn2_mean"]) * scale2 + p["bn2_beta"]).reshape(1, 16)

    # linear: torch flatten column order is (c2, oh, ow); our activation is
    # (patch, c2) -> permute rows accordingly and pre-transpose.
    wlin = p["lin_w"].reshape(HIDDEN, 16, 25).transpose(2, 1, 0).reshape(400, HIDDEN)
    blin = p["lin_b"].reshape(1, HIDDEN)

    # LSTM: pack [Wih^T ; Whh^T] into one (256, 512) weight, pre-sum biases.
    wlstm = jnp.concatenate([p["lstm_wih"].T, p["lstm_whh"].T], axis=0)
    blstm = (p["lstm_bih"] + p["lstm_bhh"]).reshape(1, 4 * HIDDEN)

    return dict(
        w1=w1, b1=b1, w2=w2, b2=b2,
        wlin=wlin, blin=blin, wlstm=wlstm, blstm=blstm,
        wv1=p["v1_w"].T, bv1=p["v1_b"].reshape(1, -1),
        wv2=p["v2_w"].T, bv2=p["v2_b"].reshape(1, -1),
        wa1=p["a1_w"].T, ba1=p["a1_b"].reshape(1, -1),
        wa2=p["a2_w"].T, ba2=p["a2_b"].reshape(1, -1),
    )


# --------------------------------------------------------------- forward ----

def r2d2_forward(fp, state, history):
    # state: (N, 1, 84, 84) f32 NCHW; history = (h, c), each (1, N, 128)
    n = state.shape[0]
    h0 = history[0].reshape(n, HIDDEN)
    c0 = history[1].reshape(n, HIDDEN)

    # conv trunk: one fused Pallas kernel (conv1+BN1+ReLU, conv2+BN2+ReLU)
    patches = _im2col_wide(state)                      # (N*25, 1024) XLA glue
    y2 = _pcall(_conv_trunk_kernel,
                jax.ShapeDtypeStruct((n * 25, 16), jnp.float32),
                patches, fp["w1"], fp["b1"], fp["w2"], fp["b2"])

    # torch.flatten(x, 1) equivalent: row-major metadata reshape (no gather,
    # no transpose); the linear weight rows were permuted to match at fold time.
    x_flat = y2.reshape(n, 400)

    # linear + LSTM cell + dueling head: second fused Pallas kernel
    act = fp["wa2"].shape[1]
    q, h1, c1 = _pcall(
        _mlp_lstm_head_kernel,
        (jax.ShapeDtypeStruct((n, act), jnp.float32),
         jax.ShapeDtypeStruct((n, HIDDEN), jnp.float32),
         jax.ShapeDtypeStruct((n, HIDDEN), jnp.float32)),
        x_flat, h0, c0,
        fp["wlin"], fp["blin"], fp["wlstm"], fp["blstm"],
        fp["wv1"], fp["bv1"], fp["wv2"], fp["bv2"],
        fp["wa1"], fp["ba1"], fp["wa2"], fp["ba2"])

    return q, (h1.reshape(1, n, HIDDEN), c1.reshape(1, n, HIDDEN))


# ------------------------------------------------------------------ main ----

if __name__ == "__main__":
    key = jax.random.PRNGKey(0)
    pkey, xkey = jax.random.split(key)
    params = init_params(pkey)
    folded = fold_params(params)   # one-time folding, outside jit

    N = 2  # batch; 84x84 frames are forced by Linear(16*5*5, 128)
    state = jax.random.normal(xkey, (N, 1, 84, 84), jnp.float32)
    # getNewHistory() analogue (zeros), broadcast to batch N
    history = (jnp.zeros((1, N, HIDDEN), jnp.float32),
               jnp.zeros((1, N, HIDDEN), jnp.float32))

    fwd = jax.jit(r2d2_forward)
    q, (h1, c1) = fwd(folded, state, history)
    jax.block_until_ready((q, h1, c1))

    assert q.shape == (N, ACTION_SIZE)
    assert h1.shape == (1, N, HIDDEN) and c1.shape == (1, N, HIDDEN)
    assert bool(jnp.all(jnp.isfinite(q)))
    assert bool(jnp.all(jnp.isfinite(h1))) and bool(jnp.all(jnp.isfinite(c1)))
    print("KERNEL_OK")
</pallas_src>

<mosaic_0001>
module attributes {stable_mosaic.version = 11 : i64} {
  func.func @_conv_trunk_kernel(%arg0: memref<50x1024xf32, #tpu.memory_space<vmem>>, %arg1: memref<1024x64xf32, #tpu.memory_space<vmem>>, %arg2: memref<1x64xf32, #tpu.memory_space<vmem>>, %arg3: memref<64x16xf32, #tpu.memory_space<vmem>>, %arg4: memref<1x16xf32, #tpu.memory_space<vmem>>, %arg5: memref<50x16xf32, #tpu.memory_space<vmem>>) attributes {dimension_semantics = [], scalar_prefetch = 0 : i64, scratch_operands = 0 : i64, tpu.core_type = #tpu.core_type<tc>} {
    %c0 = arith.constant 0 : index
    %c0_0 = arith.constant 0 : index
    %0 = vector.load %arg0[%c0, %c0_0] : memref<50x1024xf32, #tpu.memory_space<vmem>>, vector<50x1024xf32>
    %c0_1 = arith.constant 0 : index
    %c0_2 = arith.constant 0 : index
    %1 = vector.load %arg1[%c0_1, %c0_2] : memref<1024x64xf32, #tpu.memory_space<vmem>>, vector<1024x64xf32>
    %cst = arith.constant dense<0.000000e+00> : vector<50x64xf32>
    %2 = tpu.matmul %0, %1, %cst {dimension_numbers = #tpu.dot_dimension_numbers<[1], [0], [0], [1], [0, 0, 1, 1], [], []>} : vector<50x1024xf32>, vector<1024x64xf32>, vector<50x64xf32> -> vector<50x64xf32>
    %c0_3 = arith.constant 0 : index
    %c0_4 = arith.constant 0 : index
    %3 = vector.load %arg2[%c0_3, %c0_4] : memref<1x64xf32, #tpu.memory_space<vmem>>, vector<1x64xf32>
    %4 = vector.broadcast %3 : vector<1x64xf32> to vector<50x64xf32>
    %5 = arith.addf %2, %4 : vector<50x64xf32>
    %cst_5 = arith.constant 0.000000e+00 : f32
    %6 = vector.broadcast %cst_5 : f32 to vector<50x64xf32>
    %7 = arith.maximumf %5, %6 : vector<50x64xf32>
    %c0_6 = arith.constant 0 : index
    %c0_7 = arith.constant 0 : index
    %8 = vector.load %arg3[%c0_6, %c0_7] : memref<64x16xf32, #tpu.memory_space<vmem>>, vector<64x16xf32>
    %cst_8 = arith.constant dense<0.000000e+00> : vector<50x16xf32>
    %9 = tpu.matmul %7, %8, %cst_8 {dimension_numbers = #tpu.dot_dimension_numbers<[1], [0], [0], [1], [0, 0, 1, 1], [], []>} : vector<50x64xf32>, vector<64x16xf32>, vector<50x16xf32> -> vector<50x16xf32>
    %c0_9 = arith.constant 0 : index
    %c0_10 = arith.constant 0 : index
    %10 = vector.load %arg4[%c0_9, %c0_10] : memref<1x16xf32, #tpu.memory_space<vmem>>, vector<1x16xf32>
    %11 = vector.broadcast %10 : vector<1x16xf32> to vector<50x16xf32>
    %12 = arith.addf %9, %11 : vector<50x16xf32>
    %cst_11 = arith.constant 0.000000e+00 : f32
    %13 = vector.broadcast %cst_11 : f32 to vector<50x16xf32>
    %14 = arith.maximumf %12, %13 : vector<50x16xf32>
    %c0_12 = arith.constant 0 : index
    %c0_13 = arith.constant 0 : index
    %15 = vector.load %arg5[%c0_12, %c0_13] : memref<50x16xf32, #tpu.memory_space<vmem>>, vector<50x16xf32>
    tpu.vector_store %arg5[%c0_12, %c0_13], %14 {strides = array<i32>} : memref<50x16xf32, #tpu.memory_space<vmem>>, vector<50x16xf32>,
    return
  }
}

module attributes {stable_mosaic.version = 11 : i64} {
  func.func @_mlp_lstm_head_kernel(%arg0: memref<2x400xf32, #tpu.memory_space<vmem>>, %arg1: memref<2x128xf32, #tpu.memory_space<vmem>>, %arg2: memref<2x128xf32, #tpu.memory_space<vmem>>, %arg3: memref<400x128xf32, #tpu.memory_space<vmem>>, %arg4: memref<1x128xf32, #tpu.memory_space<vmem>>, %arg5: memref<256x512xf32, #tpu.memory_space<vmem>>, %arg6: memref<1x512xf32, #tpu.memory_space<vmem>>, %arg7: memref<128x64xf32, #tpu.memory_space<vmem>>, %arg8: memref<1x64xf32, #tpu.memory_space<vmem>>, %arg9: memref<64x1xf32, #tpu.memory_space<vmem>>, %arg10: memref<1x1xf32, #tpu.memory_space<vmem>>, %arg11: memref<128x64xf32, #tpu.memory_space<vmem>>, %arg12: memref<1x64xf32, #tpu.memory_space<vmem>>, %arg13: memref<64x18xf32, #tpu.memory_space<vmem>>, %arg14: memref<1x18xf32, #tpu.memory_space<vmem>>, %arg15: memref<2x18xf32, #tpu.memory_space<vmem>>, %arg16: memref<2x128xf32, #tpu.memory_space<vmem>>, %arg17: memref<2x128xf32, #tpu.memory_space<vmem>>) attributes {dimension_semantics = [], scalar_prefetch = 0 : i64, scratch_operands = 0 : i64, tpu.core_type = #tpu.core_type<tc>} {
    %c0 = arith.constant 0 : index
    %c0_0 = arith.constant 0 : index
    %0 = vector.load %arg0[%c0, %c0_0] : memref<2x400xf32, #tpu.memory_space<vmem>>, vector<2x400xf32>
    %c0_1 = arith.constant 0 : index
    %c0_2 = arith.constant 0 : index
    %1 = vector.load %arg3[%c0_1, %c0_2] : memref<400x128xf32, #tpu.memory_space<vmem>>, vector<400x128xf32>
    %cst = arith.constant dense<0.000000e+00> : vector<2x128xf32>
    %2 = tpu.matmul %0, %1, %cst {dimension_numbers = #tpu.dot_dimension_numbers<[1], [0], [0], [1], [0, 0, 1, 1], [], []>} : vector<2x400xf32>, vector<400x128xf32>, vector<2x128xf32> -> vector<2x128xf32>
    %c0_3 = arith.constant 0 : index
    %c0_4 = arith.constant 0 : index
    %3 = vector.load %arg4[%c0_3, %c0_4] : memref<1x128xf32, #tpu.memory_space<vmem>>, vector<1x128xf32>
    %4 = vector.broadcast %3 : vector<1x128xf32> to vector<2x128xf32>
    %5 = arith.addf %2, %4 : vector<2x128xf32>
    %c0_5 = arith.constant 0 : index
    %c0_6 = arith.constant 0 : index
    %6 = vector.load %arg1[%c0_5, %c0_6] : memref<2x128xf32, #tpu.memory_space<vmem>>, vector<2x128xf32>
    %7 = tpu.concatenate %5, %6 in 1 : vector<2x128xf32>, vector<2x128xf32> -> vector<2x256xf32>
    %c0_7 = arith.constant 0 : index
    %c0_8 = arith.constant 0 : index
    %8 = vector.load %arg5[%c0_7, %c0_8] : memref<256x512xf32, #tpu.memory_space<vmem>>, vector<256x512xf32>
    %cst_9 = arith.constant dense<0.000000e+00> : vector<2x512xf32>
    %9 = tpu.matmul %7, %8, %cst_9 {dimension_numbers = #tpu.dot_dimension_numbers<[1], [0], [0], [1], [0, 0, 1, 1], [], []>} : vector<2x256xf32>, vector<256x512xf32>, vector<2x512xf32> -> vector<2x512xf32>
    %c0_10 = arith.constant 0 : index
    %c0_11 = arith.constant 0 : index
    %10 = vector.load %arg6[%c0_10, %c0_11] : memref<1x512xf32, #tpu.memory_space<vmem>>, vector<1x512xf32>
    %11 = vector.broadcast %10 : vector<1x512xf32> to vector<2x512xf32>
    %12 = arith.addf %9, %11 : vector<2x512xf32>
    %13 = vector.extract_strided_slice %12 {offsets = [0, 0], sizes = [2, 128], strides = [1, 1]} : vector<2x512xf32> to vector<2x128xf32>
    %14 = arith.negf %13 : vector<2x128xf32>
    %15 = math.exp %14 : vector<2x128xf32>
    %cst_12 = arith.constant 1.000000e+00 : f32
    %16 = vector.broadcast %cst_12 : f32 to vector<2x128xf32>
    %17 = arith.addf %16, %15 : vector<2x128xf32>
    %18 = arith.divf %16, %17 : vector<2x128xf32>
    %19 = vector.extract_strided_slice %12 {offsets = [0, 128], sizes = [2, 128], strides = [1, 1]} : vector<2x512xf32> to vector<2x128xf32>
    %20 = arith.negf %19 : vector<2x128xf32>
    %21 = math.exp %20 : vector<2x128xf32>
    %cst_13 = arith.constant 1.000000e+00 : f32
    %22 = vector.broadcast %cst_13 : f32 to vector<2x128xf32>
    %23 = arith.addf %22, %21 : vector<2x128xf32>
    %24 = arith.divf %22, %23 : vector<2x128xf32>
    %25 = vector.extract_strided_slice %12 {offsets = [0, 256], sizes = [2, 128], strides = [1, 1]} : vector<2x512xf32> to vector<2x128xf32>
    %26 = math.tanh %25 : vector<2x128xf32>
    %27 = vector.extract_strided_slice %12 {offsets = [0, 384], sizes = [2, 128], strides = [1, 1]} : vector<2x512xf32> to vector<2x128xf32>
    %28 = arith.negf %27 : vector<2x128xf32>
    %29 = math.exp %28 : vector<2x128xf32>
    %cst_14 = arith.constant 1.000000e+00 : f32
    %30 = vector.broadcast %cst_14 : f32 to vector<2x128xf32>
    %31 = arith.addf %30, %29 : vector<2x128xf32>
    %32 = arith.divf %30, %31 : vector<2x128xf32>
    %c0_15 = arith.constant 0 : index
    %c0_16 = arith.constant 0 : index
    %33 = vector.load %arg2[%c0_15, %c0_16] : memref<2x128xf32, #tpu.memory_space<vmem>>, vector<2x128xf32>
    %34 = arith.mulf %24, %33 : vector<2x128xf32>
    %35 = arith.mulf %18, %26 : vector<2x128xf32>
    %36 = arith.addf %34, %35 : vector<2x128xf32>
    %37 = math.tanh %36 : vector<2x128xf32>
    %38 = arith.mulf %32, %37 : vector<2x128xf32>
    %c0_17 = arith.constant 0 : index
    %c0_18 = arith.constant 0 : index
    %39 = vector.load %arg16[%c0_17, %c0_18] : memref<2x128xf32, #tpu.memory_space<vmem>>, vector<2x128xf32>
    tpu.vector_store %arg16[%c0_17, %c0_18], %38 {strides = array<i32>} : memref<2x128xf32, #tpu.memory_space<vmem>>, vector<2x128xf32>,
    %c0_19 = arith.constant 0 : index
    %c0_20 = arith.constant 0 : index
    %40 = vector.load %arg17[%c0_19, %c0_20] : memref<2x128xf32, #tpu.memory_space<vmem>>, vector<2x128xf32>
    tpu.vector_store %arg17[%c0_19, %c0_20], %36 {strides = array<i32>} : memref<2x128xf32, #tpu.memory_space<vmem>>, vector<2x128xf32>,
    %c0_21 = arith.constant 0 : index
    %c0_22 = arith.constant 0 : index
    %41 = vector.load %arg7[%c0_21, %c0_22] : memref<128x64xf32, #tpu.memory_space<vmem>>, vector<128x64xf32>
    %cst_23 = arith.constant dense<0.000000e+00> : vector<2x64xf32>
    %42 = tpu.matmul %38, %41, %cst_23 {dimension_numbers = #tpu.dot_dimension_numbers<[1], [0], [0], [1], [0, 0, 1, 1], [], []>} : vector<2x128xf32>, vector<128x64xf32>, vector<2x64xf32> -> vector<2x64xf32>
    %c0_24 = arith.constant 0 : index
    %c0_25 = arith.constant 0 : index
    %43 = vector.load %arg8[%c0_24, %c0_25] : memref<1x64xf32, #tpu.memory_space<vmem>>, vector<1x64xf32>
    %44 = vector.broadcast %43 : vector<1x64xf32> to vector<2x64xf32>
    %45 = arith.addf %42, %44 : vector<2x64xf32>
    %cst_26 = arith.constant 0.000000e+00 : f32
    %46 = vector.broadcast %cst_26 : f32 to vector<2x64xf32>
    %47 = arith.maximumf %45, %46 : vector<2x64xf32>
    %c0_27 = arith.constant 0 : index
    %c0_28 = arith.constant 0 : index
    %48 = vector.load %arg9[%c0_27, %c0_28] : memref<64x1xf32, #tpu.memory_space<vmem>>, vector<64x1xf32>
    %cst_29 = arith.constant dense<0.000000e+00> : vector<2x1xf32>
    %49 = tpu.matmul %47, %48, %cst_29 {dimension_numbers = #tpu.dot_dimension_numbers<[1], [0], [0], [1], [0, 0, 1, 1], [], []>} : vector<2x64xf32>, vector<64x1xf32>, vector<2x1xf32> -> vector<2x1xf32>
    %c0_30 = arith.constant 0 : index
    %c0_31 = arith.constant 0 : index
    %50 = vector.load %arg10[%c0_30, %c0_31] : memref<1x1xf32, #tpu.memory_space<vmem>>, vector<1x1xf32>
    %51 = vector.broadcast %50 : vector<1x1xf32> to vector<2x1xf32>
    %52 = arith.addf %49, %51 : vector<2x1xf32>
    %c0_32 = arith.constant 0 : index
    %c0_33 = arith.constant 0 : index
    %53 = vector.load %arg11[%c0_32, %c0_33] : memref<128x64xf32, #tpu.memory_space<vmem>>, vector<128x64xf32>
    %cst_34 = arith.constant dense<0.000000e+00> : vector<2x64xf32>
    %54 = tpu.matmul %38, %53, %cst_34 {dimension_numbers = #tpu.dot_dimension_numbers<[1], [0], [0], [1], [0, 0, 1, 1], [], []>} : vector<2x128xf32>, vector<128x64xf32>, vector<2x64xf32> -> vector<2x64xf32>
    %c0_35 = arith.constant 0 : index
    %c0_36 = arith.constant 0 : index
    %55 = vector.load %arg12[%c0_35, %c0_36] : memref<1x64xf32, #tpu.memory_space<vmem>>, vector<1x64xf32>
    %56 = vector.broadcast %55 : vector<1x64xf32> to vector<2x64xf32>
    %57 = arith.addf %54, %56 : vector<2x64xf32>
    %cst_37 = arith.constant 0.000000e+00 : f32
    %58 = vector.broadcast %cst_37 : f32 to vector<2x64xf32>
    %59 = arith.maximumf %57, %58 : vector<2x64xf32>
    %c0_38 = arith.constant 0 : index
    %c0_39 = arith.constant 0 : index
    %60 = vector.load %arg13[%c0_38, %c0_39] : memref<64x18xf32, #tpu.memory_space<vmem>>, vector<64x18xf32>
    %cst_40 = arith.constant dense<0.000000e+00> : vector<2x18xf32>
    %61 = tpu.matmul %59, %60, %cst_40 {dimension_numbers = #tpu.dot_dimension_numbers<[1], [0], [0], [1], [0, 0, 1, 1], [], []>} : vector<2x64xf32>, vector<64x18xf32>, vector<2x18xf32> -> vector<2x18xf32>
    %c0_41 = arith.constant 0 : index
    %c0_42 = arith.constant 0 : index
    %62 = vector.load %arg14[%c0_41, %c0_42] : memref<1x18xf32, #tpu.memory_space<vmem>>, vector<1x18xf32>
    %63 = vector.broadcast %62 : vector<1x18xf32> to vector<2x18xf32>
    %64 = arith.addf %61, %63 : vector<2x18xf32>
    %65 = vector.shape_cast %64 : vector<2x18xf32> to vector<1x2x18xf32>
    %cst_43 = arith.constant dense<0.000000e+00> : vector<1xf32>
    %66 = vector.multi_reduction <add>, %65, %cst_43 [1, 2] : vector<1x2x18xf32> to vector<1xf32>
    %67 = vector.shape_cast %66 : vector<1xf32> to vector<1x1x1xf32>
    %68 = vector.extract %67[0, 0, 0] : f32 from vector<1x1x1xf32>
    %cst_44 = arith.constant 3.600000e+01 : f32
    %69 = arith.divf %68, %cst_44 : f32
    %70 = vector.broadcast %69 : f32 to vector<2x18xf32>
    %71 = arith.subf %64, %70 : vector<2x18xf32>
    %72 = vector.broadcast %52 : vector<2x1xf32> to vector<2x18xf32>
    %73 = arith.addf %72, %71 : vector<2x18xf32>
    %c0_45 = arith.constant 0 : index
    %c0_46 = arith.constant 0 : index
    %74 = vector.load %arg15[%c0_45, %c0_46] : memref<2x18xf32, #tpu.memory_space<vmem>>, vector<2x18xf32>
    tpu.vector_store %arg15[%c0_45, %c0_46], %73 {strides = array<i32>} : memref<2x18xf32, #tpu.memory_space<vmem>>, vector<2x18xf32>,
    return
  }
}

</mosaic_0001>

<bundles_post_ra>
// kernel: r2d2_forward.2
= control target key start
LH: loop header
LB: loop body
LE: loop exit
PB: predicated region body
PF: predicated region fallthrough
CT: control target
= control target key end

     0   :  { %vm531_vm0 = vcmask 523264   ;;  %vm598_vm1 = vcmask 130048   ;;  %vm605_vm2 = vcmask 123904   ;;  %s1344_s1 = inlined_call_operand.vmem [shape: f32[1024,64], index: 1, kind: input, shape index: {}]   ;;  %s1345_s0 = inlined_call_operand.vmem [shape: f32[50,1024], index: 0, kind: input, shape index: {}]   ;;  %s1346_s2 = inlined_call_operand.vmem [shape: f32[1,64], index: 2, kind: input, shape index: {}]   ;;  %s1347_s4 = inlined_call_operand.vmem [shape: f32[1,16], index: 4, kind: input, shape index: {}]   ;;  %s1348_s3 = inlined_call_operand.vmem [shape: f32[64,16], index: 3, kind: input, shape index: {}]   ;;  %s1349_s5 = inlined_call_operand.vmem [shape: f32[50,16], index: 5, kind: output, shape index: {}]  }
   0x1   :  { %v91_v0 = vld [vmem:[%s1344_s1 + $0x78] sm:$0xff]  ;;  %v90_v1 = vld [vmem:[%s1344_s1 + $0x70] sm:$0xff]  ;;  %v89_v2 = vld [vmem:[%s1344_s1 + $0x68] sm:$0xff] }
   0x2   :  { %618 = vmatpush.msra.mxu1 %v91_v0  ;;  %208 = vmatpush.msra.mxu0 %v91_v0  ;;  %v88_v3 = vld [vmem:[%s1344_s1 + $0x60] sm:$0xff]  ;;  %v123_v4 = vld [vmem:[%s1344_s1 + $0x178] sm:$0xff]  ;;  %v122_v5 = vld [vmem:[%s1344_s1 + $0x170] sm:$0xff] }
   0x3   :  { %v139_v6 = vld [vmem:[%s1344_s1 + $0x1f8] sm:$0xff]  ;;  %284 = vmatpush.msra.mxu2 %v123_v4  ;;  %v121_v8 = vld [vmem:[%s1344_s1 + $0x168] sm:$0xff]  ;;  %v138_v9 = vld [vmem:[%s1344_s1 + $0x1f0] sm:$0xff] }
   0x4   :  { %619 = vmatpush.msra.mxu1 %v90_v1  ;;  %209 = vmatpush.msra.mxu0 %v90_v1  ;;  %v87_v7 = vld [vmem:[%s1344_s1 + $0x58] sm:$0xff]  ;;  %v86_v10 = vld [vmem:[%s1344_s1 + $0x50] sm:$0xff]  ;;  %v137_v11 = vld [vmem:[%s1344_s1 + $0x1e8] sm:$0xff] }
   0x5   :  { %322 = vmatpush.msra.mxu3 %v139_v6  ;;  %285 = vmatpush.msra.mxu2 %v122_v5  ;;  %v120_v12 = vld [vmem:[%s1344_s1 + $0x160] sm:$0xff]  ;;  %v85_v14 = vld [vmem:[%s1344_s1 + $0x48] sm:$0xff]  ;;  %v119_v15 = vld [vmem:[%s1344_s1 + $0x158] sm:$0xff] }
   0x6   :  { %620 = vmatpush.msra.mxu1 %v89_v2  ;;  %210 = vmatpush.msra.mxu0 %v89_v2  ;;  %v136_v13 = vld [vmem:[%s1344_s1 + $0x1e0] sm:$0xff]  ;;  %v135_v16 = vld [vmem:[%s1344_s1 + $0x1d8] sm:$0xff]  ;;  %v118_v18 = vld [vmem:[%s1344_s1 + $0x150] sm:$0xff] }
   0x7   :  { %323 = vmatpush.msra.mxu3 %v138_v9  ;;  %286 = vmatpush.msra.mxu2 %v121_v8  ;;  %v84_v17 = vld [vmem:[%s1344_s1 + $0x40] sm:$0xff]  ;;  %v134_v19 = vld [vmem:[%s1344_s1 + $0x1d0] sm:$0xff]  ;;  %v83_v20 = vld [vmem:[%s1344_s1 + $0x38] sm:$0xff] }
   0x8   :  { %621 = vmatpush.msra.mxu1 %v88_v3  ;;  %211 = vmatpush.msra.mxu0 %v88_v3  ;;  %v117_v21 = vld [vmem:[%s1344_s1 + $0x148] sm:$0xff]  ;;  %v82_v23 = vld [vmem:[%s1344_s1 + $0x30] sm:$0xff]  ;;  %v116_v24 = vld [vmem:[%s1344_s1 + $0x140] sm:$0xff] }
   0x9   :  { %324 = vmatpush.msra.mxu3 %v137_v11  ;;  %287 = vmatpush.msra.mxu2 %v120_v12  ;;  %v133_v22 = vld [vmem:[%s1344_s1 + $0x1c8] sm:$0xff]  ;;  %v132_v25 = vld [vmem:[%s1344_s1 + $0x1c0] sm:$0xff]  ;;  %v115_v27 = vld [vmem:[%s1344_s1 + $0x138] sm:$0xff] }
   0xa   :  { %622 = vmatpush.msra.mxu1 %v87_v7  ;;  %212 = vmatpush.msra.mxu0 %v87_v7  ;;  %v81_v26 = vld [vmem:[%s1344_s1 + $0x28] sm:$0xff]  ;;  %v131_v28 = vld [vmem:[%s1344_s1 + $0x1b8] sm:$0xff]  ;;  %v80_v29 = vld [vmem:[%s1344_s1 + $0x20] sm:$0xff] }
   0xb   :  { %325 = vmatpush.msra.mxu3 %v136_v13  ;;  %288 = vmatpush.msra.mxu2 %v119_v15  ;;  %v114_v30 = vld [vmem:[%s1344_s1 + $0x130] sm:$0xff]  ;;  %v79_v32 = vld [vmem:[%s1344_s1 + $0x18] sm:$0xff]  ;;  %v113_v33 = vld [vmem:[%s1344_s1 + $0x128] sm:$0xff] }
   0xc   :  { %623 = vmatpush.msra.mxu1 %v86_v10  ;;  %213 = vmatpush.msra.mxu0 %v86_v10  ;;  %v130_v31 = vld [vmem:[%s1344_s1 + $0x1b0] sm:$0xff]  ;;  %v129_v34 = vld [vmem:[%s1344_s1 + $0x1a8] sm:$0xff]  ;;  %v112_v36 = vld [vmem:[%s1344_s1 + $0x120] sm:$0xff] }
   0xd   :  { %326 = vmatpush.msra.mxu3 %v135_v16  ;;  %289 = vmatpush.msra.mxu2 %v118_v18  ;;  %v78_v35 = vld [vmem:[%s1344_s1 + $0x10] sm:$0xff]  ;;  %v128_v37 = vld [vmem:[%s1344_s1 + $0x1a0] sm:$0xff]  ;;  %v77_v38 = vld [vmem:[%s1344_s1 + $0x8] sm:$0xff] }
   0xe   :  { %624 = vmatpush.msra.mxu1 %v85_v14  ;;  %214 = vmatpush.msra.mxu0 %v85_v14  ;;  %v111_v39 = vld [vmem:[%s1344_s1 + $0x118] sm:$0xff]  ;;  %v76_v41 = vld [vmem:[%s1344_s1] sm:$0xff]  ;;  %v106_v46 = vld [vmem:[%s1344_s1 + $0xf0] sm:$0xff] }
   0xf   :  { %327 = vmatpush.msra.mxu3 %v134_v19  ;;  %290 = vmatpush.msra.mxu2 %v117_v21  ;;  %v127_v40 = vld [vmem:[%s1344_s1 + $0x198] sm:$0xff]  ;;  %v20_v43 = vld [vmem:[%s1345_s0] sm:$0xff]  ;;  %v110_v47 = vld [vmem:[%s1344_s1 + $0x110] sm:$0xff] }
  0x10   :  { %625 = vmatpush.msra.mxu1 %v84_v17  ;;  %215 = vmatpush.msra.mxu0 %v84_v17  ;;  %v107_v42 = vld [vmem:[%s1344_s1 + $0xf8] sm:$0xff]  ;;  %v52_v45 = vld [vmem:[%s1345_s0 + $0x100] sm:$0xff]  ;;  %v154_v48 = vld [vmem:[%s1344_s1 + $0x270] sm:$0xff] }
  0x11   :  { %328 = vmatpush.msra.mxu3 %v133_v22  ;;  %291 = vmatpush.msra.mxu2 %v116_v24  ;;  %v155_v44 = vld [vmem:[%s1344_s1 + $0x278] sm:$0xff]  ;;  %v126_v49 = vld [vmem:[%s1344_s1 + $0x190] sm:$0xff]  ;;  %v105_v50 = vld [vmem:[%s1344_s1 + $0xe8] sm:$0xff] }
  0x12   :  { %626 = vmatpush.msra.mxu1 %v83_v20  ;;  %216 = vmatpush.msra.mxu0 %v83_v20  ;;  %v109_v51 = vld [vmem:[%s1344_s1 + $0x108] sm:$0xff]  ;;  %v104_v54 = vld [vmem:[%s1344_s1 + $0xe0] sm:$0xff]  ;;  %v22_v57 = vld [vmem:[%s1345_s0 + $0x10] sm:$0xff] }
  0x13   :  { %329 = vmatpush.msra.mxu3 %v132_v25  ;;  %292 = vmatpush.msra.mxu2 %v115_v27  ;;  %v153_v52 = vld [vmem:[%s1344_s1 + $0x268] sm:$0xff]  ;;  %v108_v55 = vld [vmem:[%s1344_s1 + $0x100] sm:$0xff]  ;;  %v103_v58 = vld [vmem:[%s1344_s1 + $0xd8] sm:$0xff] }
  0x14   :  { %627 = vmatpush.msra.mxu1 %v82_v23  ;;  %217 = vmatpush.msra.mxu0 %v82_v23  ;;  %v125_v53 = vld [vmem:[%s1344_s1 + $0x188] sm:$0xff]  ;;  %v152_v56 = vld [vmem:[%s1344_s1 + $0x260] sm:$0xff]  ;;  %v151_v60 = vld [vmem:[%s1344_s1 + $0x258] sm:$0xff] }
  0x15   :  { %330 = vmatpush.msra.mxu3 %v131_v28  ;;  %293 = vmatpush.msra.mxu2 %v114_v30  ;;  %v28_v59 = vld [vmem:[%s1345_s0 + $0x40] sm:$0xff]  ;;  %v102_v62 = vld [vmem:[%s1344_s1 + $0xd0] sm:$0xff]  ;;  %v187_v63 = vld [vmem:[%s1344_s1 + $0x378] sm:$0xff] }
  0x16   :  { %628 = vmatpush.msra.mxu1 %v81_v26  ;;  %218 = vmatpush.msra.mxu0 %v81_v26  ;;  %v60_v61 = vld [vmem:[%s1345_s0 + $0x140] sm:$0xff]  ;;  %v150_v0 = vld [vmem:[%s1344_s1 + $0x250] sm:$0xff]  ;;  %v101_v2 = vld [vmem:[%s1344_s1 + $0xc8] sm:$0xff] }
  0x17   :  { %331 = vmatpush.msra.mxu3 %v130_v31  ;;  %294 = vmatpush.msra.mxu2 %v113_v33  ;;  %v124_v1 = vld [vmem:[%s1344_s1 + $0x180] sm:$0xff]  ;;  %v23_v3 = vld [vmem:[%s1345_s0 + $0x18] sm:$0xff]  ;;  %v149_v4 = vld [vmem:[%s1344_s1 + $0x248] sm:$0xff] }
  0x18   :  { %629 = vmatpush.msra.mxu1 %v80_v29  ;;  %219 = vmatpush.msra.mxu0 %v80_v29  ;;  %v203_v5 = vld [vmem:[%s1344_s1 + $0x3f8] sm:$0xff]  ;;  %v100_v6 = vld [vmem:[%s1344_s1 + $0xc0] sm:$0xff]  ;;  %v186_v7 = vld [vmem:[%s1344_s1 + $0x370] sm:$0xff] }
  0x19   :  { %332 = vmatpush.msra.mxu3 %v129_v34  ;;  %295 = vmatpush.msra.mxu2 %v112_v36  ;;  %v148_v8 = vld [vmem:[%s1344_s1 + $0x240] sm:$0xff]  ;;  %v202_v9 = vld [vmem:[%s1344_s1 + $0x3f0] sm:$0xff]  ;;  %v99_v10 = vld [vmem:[%s1344_s1 + $0xb8] sm:$0xff] }
  0x1a   :  { %630 = vmatpush.msra.mxu1 %v79_v32  ;;  %220 = vmatpush.msra.mxu0 %v79_v32  ;;  %v36_v11 = vld [vmem:[%s1345_s0 + $0x80] sm:$0xff]  ;;  %v147_v12 = vld [vmem:[%s1344_s1 + $0x238] sm:$0xff]  ;;  %v98_v14 = vld [vmem:[%s1344_s1 + $0xb0] sm:$0xff] }
  0x1b   :  { %333 = vmatpush.msra.mxu3 %v128_v37  ;;  %296 = vmatpush.msra.mxu2 %v111_v39  ;;  %v68_v13 = vld [vmem:[%s1345_s0 + $0x180] sm:$0x3]  ;;  %v185_v15 = vld [vmem:[%s1344_s1 + $0x368] sm:$0xff]  ;;  %v146_v16 = vld [vmem:[%s1344_s1 + $0x230] sm:$0xff] }
  0x1c   :  { %631 = vmatpush.msra.mxu1 %v78_v35  ;;  %221 = vmatpush.msra.mxu0 %v78_v35  ;;  %v30_v17 = vld [vmem:[%s1345_s0 + $0x50] sm:$0xff]  ;;  %v97_v18 = vld [vmem:[%s1344_s1 + $0xa8] sm:$0xff]  ;;  %v31_v21 = vld [vmem:[%s1345_s0 + $0x58] sm:$0xff] }
  0x1d   :  { %334 = vmatpush.msra.mxu3 %v127_v40  ;;  %297 = vmatpush.msra.mxu2 %v110_v47  ;;  %v201_v19 = vld [vmem:[%s1344_s1 + $0x3e8] sm:$0xff]  ;;  %v96_v22 = vld [vmem:[%s1344_s1 + $0xa0] sm:$0xff]  ;;  %v95_v26 = vld [vmem:[%s1344_s1 + $0x98] sm:$0xff] }
  0x1e   :  { %632 = vmatpush.msra.mxu1 %v77_v38  ;;  %222 = vmatpush.msra.mxu0 %v77_v38  ;;  %v145_v20 = vld [vmem:[%s1344_s1 + $0x228] sm:$0xff]  ;;  %v184_v23 = vld [vmem:[%s1344_s1 + $0x360] sm:$0xff]  ;;  %v143_v28 = vld [vmem:[%s1344_s1 + $0x218] sm:$0xff] }
  0x1f   :  { %335 = vmatpush.msra.mxu3 %v126_v49  ;;  %298 = vmatpush.msra.mxu2 %v109_v51  ;;  %v144_v24 = vld [vmem:[%s1344_s1 + $0x220] sm:$0xff]  ;;  %v183_v29 = vld [vmem:[%s1344_s1 + $0x358] sm:$0xff]  ;;  %v94_v30 = vld [vmem:[%s1344_s1 + $0x90] sm:$0xff] }
  0x20   :  { %633 = vmatpush.msra.mxu1 %v76_v41  ;;  %223 = vmatpush.msra.mxu0 %v76_v41  ;;  %v200_v25 = vld [vmem:[%s1344_s1 + $0x3e0] sm:$0xff]  ;;  %v199_v31 = vld [vmem:[%s1344_s1 + $0x3d8] sm:$0xff]  ;;  %v142_v32 = vld [vmem:[%s1344_s1 + $0x210] sm:$0xff] }
  0x21   :  { %224 = vmatmul.f32.vlgmr.msra.gmra.mxu0 %v20_v43  ;;  %236 = vmatmul.f32.vlgmr.msra.gmra.mxu1 %v52_v45  ;;  %v44_v27 = vld [vmem:[%s1345_s0 + $0xc0] sm:$0xff]  ;;  %v38_v33 = vld [vmem:[%s1345_s0 + $0x90] sm:$0xff]  ;;  %v93_v34 = vld [vmem:[%s1344_s1 + $0x88] sm:$0xff] }
  0x22   :  { %246 = vmatpush.msrb.mxu1 %v107_v42  ;;  %360 = vmatpush.msrb.mxu0 %v155_v44  ;;  %v182_v35 = vld [vmem:[%s1344_s1 + $0x350] sm:$0xff]  ;;  %v141_v36 = vld [vmem:[%s1344_s1 + $0x208] sm:$0xff]  ;;  %v39_v37 = vld [vmem:[%s1345_s0 + $0x98] sm:$0xff] }
  0x23   :  { %336 = vmatpush.msra.mxu3 %v125_v53  ;;  %299 = vmatpush.msra.mxu2 %v108_v55  ;;  %v92_v38 = vld [vmem:[%s1344_s1 + $0x80] sm:$0xff]  ;;  %v198_v39 = vld [vmem:[%s1344_s1 + $0x3d0] sm:$0xff]  ;;  %v21_v40 = vld [vmem:[%s1345_s0 + $0x8] sm:$0xff] }
  0x24   :  { %247 = vmatpush.msrb.mxu1 %v106_v46  ;;  %361 = vmatpush.msrb.mxu0 %v154_v48  ;;  %v140_v41 = vld [vmem:[%s1344_s1 + $0x200] sm:$0xff]  ;;  %v171_v42 = vld [vmem:[%s1344_s1 + $0x2f8] sm:$0xff]  ;;  %v181_v44 = vld [vmem:[%s1344_s1 + $0x348] sm:$0xff] }
  0x25   :  { %300 = vmatmul.f32.vlgmr.msra.gmra.mxu2 %v22_v57  ;;  %337 = vmatpush.msra.mxu3 %v124_v1  ;;  %v24_v43 = vld [vmem:[%s1345_s0 + $0x20] sm:$0xff]  ;;  %v197_v45 = vld [vmem:[%s1344_s1 + $0x3c8] sm:$0xff]  ;;  %v170_v46 = vld [vmem:[%s1344_s1 + $0x2f0] sm:$0xff] }
  0x26   :  { %248 = vmatpush.msrb.mxu1 %v105_v50  ;;  %362 = vmatpush.msrb.mxu0 %v153_v52  ;;  %v46_v47 = vld [vmem:[%s1345_s0 + $0xd0] sm:$0xff]  ;;  %v196_v48 = vld [vmem:[%s1344_s1 + $0x3c0] sm:$0xff]  ;;  %v169_v49 = vld [vmem:[%s1344_s1 + $0x2e8] sm:$0xff] }
  0x27   :  { %436 = vmatpush.msrb.mxu2 %v187_v63  ;;  %338 = vmatmul.f32.vlgmr.msra.gmra.mxu3 %v23_v3  ;;  %v180_v50 = vld [vmem:[%s1344_s1 + $0x340] sm:$0xff]  ;;  %v47_v51 = vld [vmem:[%s1345_s0 + $0xd8] sm:$0xff]  ;;  %v165_v63 = vld [vmem:[%s1344_s1 + $0x2c8] sm:$0xff] }
  0x28   :  { %249 = vmatpush.msrb.mxu1 %v104_v54  ;;  %363 = vmatpush.msrb.mxu0 %v152_v56  ;;  %v168_v52 = vld [vmem:[%s1344_s1 + $0x2e0] sm:$0xff]  ;;  %v179_v53 = vld [vmem:[%s1344_s1 + $0x338] sm:$0xff]  ;;  %v29_v54 = vld [vmem:[%s1345_s0 + $0x48] sm:$0xff] }
  0x29   :  { %227 = vmatmul.f32.gmra.mxu0 %v28_v59  ;;  %239 = vmatmul.f32.gmra.mxu1 %v60_v61  ;;  %v195_v55 = vld [vmem:[%s1344_s1 + $0x3b8] sm:$0xff]  ;;  %v32_v56 = vld [vmem:[%s1345_s0 + $0x60] sm:$0xff]  ;;  %v194_v59 = vld [vmem:[%s1344_s1 + $0x3b0] sm:$0xff] }
  0x2a   :  { %250 = vmatpush.msrb.mxu1 %v103_v58  ;;  %364 = vmatpush.msrb.mxu0 %v151_v60  ;;  %v167_v57 = vld [vmem:[%s1344_s1 + $0x2d8] sm:$0xff]  ;;  %v178_v58 = vld [vmem:[%s1344_s1 + $0x330] sm:$0xff]  ;;  %v176_v3 = vld [vmem:[%s1344_s1 + $0x320] sm:$0xff] }
  0x2b   :  { %474 = vmatpush.msrb.mxu3 %v203_v5  ;;  %437 = vmatpush.msrb.mxu2 %v186_v7  ;;  %v166_v60 = vld [vmem:[%s1344_s1 + $0x2d0] sm:$0xff]  ;;  %v55_v1 = vld [vmem:[%s1345_s0 + $0x118] sm:$0xff]  ;;  %v192_v5 = vld [vmem:[%s1344_s1 + $0x3a0] sm:$0xff] }
  0x2c   :  { %251 = vmatpush.msrb.mxu1 %v102_v62  ;;  %365 = vmatpush.msrb.mxu0 %v150_v0  ;;  %v54_v61 = vld [vmem:[%s1345_s0 + $0x110] sm:$0xff]  ;;  %v193_v62 = vld [vmem:[%s1344_s1 + $0x3a8] sm:$0xff]  ;;  %v163_v7 = vld [vmem:[%s1344_s1 + $0x2b8] sm:$0xff] }
  0x2d   :  { %475 = vmatpush.msrb.mxu3 %v202_v9  ;;  %438 = vmatpush.msrb.mxu2 %v185_v15  ;;  %v177_v0 = vld [vmem:[%s1344_s1 + $0x328] sm:$0xff]  ;;  %v191_v9 = vld [vmem:[%s1344_s1 + $0x398] sm:$0xff] }
  0x2e   :  { %252 = vmatpush.msrb.mxu1 %v101_v2  ;;  %366 = vmatpush.msrb.mxu0 %v149_v4  ;;  %v164_v2 = vld [vmem:[%s1344_s1 + $0x2c0] sm:$0xff]  ;;  %v37_v4 = vld [vmem:[%s1345_s0 + $0x88] sm:$0xff]  ;;  %v63_v15 = vld [vmem:[%s1345_s0 + $0x158] sm:$0xff] }
  0x2f   :  { %303 = vmatmul.f32.gmra.mxu2 %v30_v17  ;;  %476 = vmatpush.msrb.mxu3 %v201_v19  ;;  %v173_v17 = vld [vmem:[%s1344_s1 + $0x308] sm:$0xff] }
  0x30   :  { %253 = vmatpush.msrb.mxu1 %v100_v6  ;;  %367 = vmatpush.msrb.mxu0 %v148_v8  ;;  %v40_v6 = vld [vmem:[%s1345_s0 + $0xa0] sm:$0xff]  ;;  %v175_v8 = vld [vmem:[%s1344_s1 + $0x318] sm:$0xff]  ;;  %v189_v19 = vld [vmem:[%s1344_s1 + $0x388] sm:$0xff] }
  0x31   :  { %230 = vmatmul.f32.gmra.mxu0 %v36_v11  ;;  %242 = vmatmul.f32.gmra.mxu1 %v68_v13  ;;  %v62_v11 = vld [vmem:[%s1345_s0 + $0x150] sm:$0xff]  ;;  %v161_v13 = vld [vmem:[%s1344_s1 + $0x2a8] sm:$0xff] }
  0x32   :  { %254 = vmatpush.msrb.mxu1 %v99_v10  ;;  %368 = vmatpush.msrb.mxu0 %v147_v12  ;;  %v162_v10 = vld [vmem:[%s1344_s1 + $0x2b0] sm:$0xff] }
  0x33   :  { %341 = vmatmul.f32.gmra.mxu3 %v31_v21  ;;  %439 = vmatpush.msrb.mxu2 %v184_v23  ;;  %v190_v12 = vld [vmem:[%s1344_s1 + $0x390] sm:$0xff]  ;;  %v159_v21 = vld [vmem:[%s1344_s1 + $0x298] sm:$0xff]  ;;  %v188_v23 = vld [vmem:[%s1344_s1 + $0x380] sm:$0xff] }
  0x34   :  { %255 = vmatpush.msrb.mxu1 %v98_v14  ;;  %369 = vmatpush.msrb.mxu0 %v146_v16  ;;  %v174_v14 = vld [vmem:[%s1344_s1 + $0x310] sm:$0xff]  ;;  %v160_v16 = vld [vmem:[%s1344_s1 + $0x2a0] sm:$0xff] }
  0x35   :  { %477 = vmatpush.msrb.mxu3 %v200_v25  ;;  %440 = vmatpush.msrb.mxu2 %v183_v29  ;;  %v70_v25 = vld [vmem:[%s1345_s0 + $0x190] sm:$0x3]  ;;  %v53_v29 = vld [vmem:[%s1345_s0 + $0x108] sm:$0xff] }
  0x36   :  { %256 = vmatpush.msrb.mxu1 %v97_v18  ;;  %370 = vmatpush.msrb.mxu0 %v145_v20  ;;  %v45_v18 = vld [vmem:[%s1345_s0 + $0xc8] sm:$0xff]  ;;  %v48_v20 = vld [vmem:[%s1345_s0 + $0xe0] sm:$0xff] }
  0x37   :  { %478 = vmatpush.msrb.mxu3 %v199_v31  ;;  %306 = vmatmul.f32.gmra.mxu2 %v38_v33  ;;  %v26_v31 = vld [vmem:[%s1345_s0 + $0x30] sm:$0xff]  ;;  %v61_v33 = vld [vmem:[%s1345_s0 + $0x148] sm:$0xff] }
  0x38   :  { %257 = vmatpush.msrb.mxu1 %v96_v22  ;;  %371 = vmatpush.msrb.mxu0 %v144_v24  ;;  %v172_v22 = vld [vmem:[%s1344_s1 + $0x300] sm:$0xff]  ;;  %v158_v24 = vld [vmem:[%s1344_s1 + $0x290] sm:$0xff] }
  0x39   :  { %233 = vmatmul.f32.gmra.mxu0 %v44_v27  ;;  %441 = vmatpush.msrb.mxu2 %v182_v35  ;;  %v71_v27 = vld [vmem:[%s1345_s0 + $0x198] sm:$0x3]  ;;  %v34_v35 = vld [vmem:[%s1345_s0 + $0x70] sm:$0xff] }
  0x3a   :  { %258 = vmatpush.msrb.mxu1 %v95_v26  ;;  %372 = vmatpush.msrb.mxu0 %v143_v28  ;;  %v157_v26 = vld [vmem:[%s1344_s1 + $0x288] sm:$0xff]  ;;  %v156_v28 = vld [vmem:[%s1344_s1 + $0x280] sm:$0xff] }
  0x3b   :  { %344 = vmatmul.f32.gmra.mxu3 %v39_v37  ;;  %442 = vmatpush.msrb.mxu2 %v181_v44  ;;  %v69_v37 = vld [vmem:[%s1345_s0 + $0x188] sm:$0x3] }
  0x3c   :  { %259 = vmatpush.msrb.mxu1 %v94_v30  ;;  %373 = vmatpush.msrb.mxu0 %v142_v32  ;;  %v56_v30 = vld [vmem:[%s1345_s0 + $0x120] sm:$0xff]  ;;  %v27_v32 = vld [vmem:[%s1345_s0 + $0x38] sm:$0xff]  ;;  %v33_v44 = vld [vmem:[%s1345_s0 + $0x68] sm:$0xff] }
  0x3d   :  { %479 = vmatpush.msrb.mxu3 %v198_v39  ;;  %443 = vmatpush.msrb.mxu2 %v180_v50  ;;  %v42_v39 = vld [vmem:[%s1345_s0 + $0xb0] sm:$0xff]  ;;  %v49_v50 = vld [vmem:[%s1345_s0 + $0xe8] sm:$0xff] }
  0x3e   :  { %260 = vmatpush.msrb.mxu1 %v93_v34  ;;  %374 = vmatpush.msrb.mxu0 %v141_v36  ;;  %v64_v34 = vld [vmem:[%s1345_s0 + $0x160] sm:$0xff]  ;;  %v35_v36 = vld [vmem:[%s1345_s0 + $0x78] sm:$0xff] }
  0x3f   :  { %480 = vmatpush.msrb.mxu3 %v197_v45  ;;  %309 = vmatmul.f32.gmra.mxu2 %v46_v47  ;;  %v58_v45 = vld [vmem:[%s1345_s0 + $0x130] sm:$0xff]  ;;  %v41_v47 = vld [vmem:[%s1345_s0 + $0xa8] sm:$0xff] }
  0x40   :  { %261 = vmatpush.msrb.mxu1 %v92_v38  ;;  %375 = vmatpush.msrb.mxu0 %v140_v41  ;;  %v72_v38 = vld [vmem:[%s1345_s0 + $0x1a0] sm:$0x3]  ;;  %v25_v41 = vld [vmem:[%s1345_s0 + $0x28] sm:$0xff] }
  0x41   :  { %262 = vmatmul.f32.vlgmr.msrb.gmra.mxu1 %v21_v40  ;;  %376 = vmatmul.f32.vlgmr.msrb.gmra.mxu0 %v24_v43  ;;  %v43_v40 = vld [vmem:[%s1345_s0 + $0xb8] sm:$0xff] }
  0x42   :  { %398 = vmatpush.msra.mxu1 %v171_v42  ;;  %481 = vmatpush.msrb.mxu3 %v196_v48  ;;  %v50_v42 = vld [vmem:[%s1345_s0 + $0xf0] sm:$0xff]  ;;  %v51_v43 = vld [vmem:[%s1345_s0 + $0xf8] sm:$0xff] }
  0x43   :  { %347 = vmatmul.f32.gmra.mxu3 %v47_v51  ;;  %444 = vmatpush.msrb.mxu2 %v179_v53  ;;  %v66_v48 = vld [vmem:[%s1345_s0 + $0x170] sm:$0xff]  ;;  %v57_v53 = vld [vmem:[%s1345_s0 + $0x128] sm:$0xff] }
  0x44   :  { %399 = vmatpush.msra.mxu1 %v170_v46  ;;  %482 = vmatpush.msrb.mxu3 %v195_v55  ;;  %v59_v46 = vld [vmem:[%s1345_s0 + $0x138] sm:$0xff]  ;;  %v74_v51 = vld [vmem:[%s1345_s0 + $0x1b0] sm:$0x3] }
  0x45   :  { %445 = vmatpush.msrb.mxu2 %v178_v58 }
  0x46   :  { %400 = vmatpush.msra.mxu1 %v169_v49  ;;  %483 = vmatpush.msrb.mxu3 %v194_v59  ;;  %v67_v49 = vld [vmem:[%s1345_s0 + $0x178] sm:$0xff] }
  0x47   :  { %312 = vmatmul.f32.gmra.mxu2 %v54_v61 }
  0x48   :  { %401 = vmatpush.msra.mxu1 %v168_v52  ;;  %484 = vmatpush.msrb.mxu3 %v193_v62  ;;  %v75_v52 = vld [vmem:[%s1345_s0 + $0x1b8] sm:$0x3] }
  0x49   :  { %265 = vmatmul.f32.gmra.mxu1 %v29_v54  ;;  %379 = vmatmul.f32.gmra.mxu0 %v32_v56  ;;  %v65_v54 = vld [vmem:[%s1345_s0 + $0x168] sm:$0xff] }
  0x4a   :  { %402 = vmatpush.msra.mxu1 %v167_v57  ;;  %446 = vmatpush.msrb.mxu2 %v177_v0  ;;  %v73_v56 = vld [vmem:[%s1345_s0 + $0x1a8] sm:$0x3] }
  0x4b   :  { %350 = vmatmul.f32.gmra.mxu3 %v55_v1 }
  0x4c   :  { %403 = vmatpush.msra.mxu1 %v166_v60  ;;  %447 = vmatpush.msrb.mxu2 %v176_v3 }
  0x4d   :  { %485 = vmatpush.msrb.mxu3 %v192_v5 }
  0x4e   :  { %404 = vmatpush.msra.mxu1 %v165_v63  ;;  %448 = vmatpush.msrb.mxu2 %v175_v8  ;;  %v526_v63 = vld [vmem:[%s1348_s3 + $0x38] sm:$0xff] }
  0x4f   :  { %486 = vmatpush.msrb.mxu3 %v191_v9  ;;  %315 = vmatmul.f32.gmra.mxu2 %v62_v11  ;;  %v524_v9 = vld [vmem:[%s1348_s3 + $0x28] sm:$0xff] }
  0x50   :  { %405 = vmatpush.msra.mxu1 %v164_v2  ;;  %449 = vmatpush.msrb.mxu2 %v174_v14  ;;  %v523_v14 = vld [vmem:[%s1348_s3 + $0x20] sm:$0xff] }
  0x51   :  { %268 = vmatmul.f32.gmra.mxu1 %v37_v4  ;;  %382 = vmatmul.f32.gmra.mxu0 %v40_v6  ;;  %v525_v4 = vld [vmem:[%s1348_s3 + $0x30] sm:$0xff] }
  0x52   :  { %406 = vmatpush.msra.mxu1 %v163_v7  ;;  %487 = vmatpush.msrb.mxu3 %v190_v12 }
  0x53   :  { %353 = vmatmul.f32.gmra.mxu3 %v63_v15  ;;  %450 = vmatpush.msrb.mxu2 %v173_v17 }
  0x54   :  { %407 = vmatpush.msra.mxu1 %v162_v10  ;;  %488 = vmatpush.msrb.mxu3 %v189_v19 }
  0x55   :  { %451 = vmatpush.msrb.mxu2 %v172_v22  ;;  %561 = vmatpush.msra.mxu0 %v526_v63  ;;  %v519_v22 = vld [vmem:[%s1348_s3] sm:$0xff] }
  0x56   :  { %408 = vmatpush.msra.mxu1 %v161_v13  ;;  %489 = vmatpush.msrb.mxu3 %v188_v23 }
  0x57   :  { %318 = vmatmul.f32.gmra.mxu2 %v70_v25  ;;  %562 = vmatpush.msra.mxu0 %v525_v4 }
  0x58   :  { %409 = vmatpush.msra.mxu1 %v160_v16  ;;  %634 = vmatpush.msra.mxu2 %v526_v63  ;;  %v522_v16 = vld [vmem:[%s1348_s3 + $0x18] sm:$0xff] }
  0x59   :  { %271 = vmatmul.f32.gmra.mxu1 %v45_v18  ;;  %385 = vmatmul.f32.gmra.mxu0 %v48_v20  ;;  %v521_v18 = vld [vmem:[%s1348_s3 + $0x10] sm:$0xff]  ;;  %v520_v20 = vld [vmem:[%s1348_s3 + $0x8] sm:$0xff] }
  0x5a   :  { %410 = vmatpush.msra.mxu1 %v159_v21  ;;  %635 = vmatpush.msra.mxu2 %v525_v4 }
  0x5b   :  { %356 = vmatmul.f32.gmra.mxu3 %v71_v27  ;;  %563 = vmatpush.msra.mxu0 %v524_v9 }
  0x5c   :  { %411 = vmatpush.msra.mxu1 %v158_v24  ;;  %636 = vmatpush.msra.mxu2 %v524_v9 }
  0x5d   :  { %564 = vmatpush.msra.mxu0 %v523_v14 }
  0x5e   :  { %412 = vmatpush.msra.mxu1 %v157_v26  ;;  %637 = vmatpush.msra.mxu2 %v523_v14  ;;  %v1281_v26 = vld [vmem:[%s1346_s2] ss:$0 sm:$0xff] }
  0x5f   :  { %452 = vmatmul.f32.vlgmr.msrb.gmra.mxu2 %v26_v31  ;;  %565 = vmatpush.msra.mxu0 %v522_v16 }
  0x60   :  { %413 = vmatpush.msra.mxu1 %v156_v28  ;;  %638 = vmatpush.msra.mxu2 %v522_v16 }
  0x61   :  { %274 = vmatmul.f32.gmra.mxu1 %v53_v29  ;;  %388 = vmatmul.f32.gmra.mxu0 %v56_v30 }
  0x62   :  { %566 = vmatpush.msra.mxu0 %v521_v18  ;;  %639 = vmatpush.msra.mxu2 %v521_v18 }
  0x63   :  { %490 = vmatmul.f32.vlgmr.msrb.gmra.mxu3 %v27_v32 }
  0x64   :  { %567 = vmatpush.msra.mxu0 %v520_v20  ;;  %640 = vmatpush.msra.mxu2 %v520_v20 }
  0x66   :  { %568 = vmatpush.msra.mxu0 %v519_v22  ;;  %641 = vmatpush.msra.mxu2 %v519_v22 }
  0x67   :  { %455 = vmatmul.f32.gmra.mxu2 %v34_v35 }
  0x69   :  { %277 = vmatmul.f32.gmra.mxu1 %v61_v33  ;;  %391 = vmatmul.f32.gmra.mxu0 %v64_v34 }
  0x6b   :  { %493 = vmatmul.f32.gmra.mxu3 %v35_v36 }
  0x6f   :  { %458 = vmatmul.f32.gmra.mxu2 %v42_v39 }
  0x71   :  { %280 = vmatmul.f32.gmra.mxu1 %v69_v37  ;;  %394 = vmatmul.f32.gmra.mxu0 %v72_v38 }
  0x73   :  { %496 = vmatmul.f32.gmra.mxu3 %v43_v40 }
  0x77   :  { %461 = vmatmul.f32.gmra.mxu2 %v50_v42 }
  0x79   :  { %414 = vmatmul.f32.vlgmr.msra.gmra.mxu1 %v25_v41 }
  0x7b   :  { %499 = vmatmul.f32.gmra.mxu3 %v51_v43 }
  0x7f   :  { %464 = vmatmul.f32.gmra.mxu2 %v58_v45 }
  0x81   :  { %417 = vmatmul.f32.gmra.mxu1 %v33_v44 }
  0x83   :  { %502 = vmatmul.f32.gmra.mxu3 %v59_v46 }
  0x87   :  { %467 = vmatmul.f32.gmra.mxu2 %v66_v48 }
  0x89   :  { %420 = vmatmul.f32.gmra.mxu1 %v41_v47 }
  0x8b   :  { %505 = vmatmul.f32.gmra.mxu3 %v67_v49 }
  0x8f   :  { %470 = vmatmul.f32.gmra.mxu2 %v74_v51 }
  0x91   :  { %423 = vmatmul.f32.gmra.mxu1 %v49_v50 }
  0x93   :  { %508 = vmatmul.f32.gmra.mxu3 %v75_v52 }
  0x99   :  { %426 = vmatmul.f32.gmra.mxu1 %v57_v53 }
  0x9e   :  { %v1223_v55 = vpop.f32.mrf.mxu1  ;;  %v225_v0 = vpop.f32.mrf.mxu0 }
  0x9f   :  { %v226_v27 = vadd.f32 %v1281_v26, %v225_v0 }
  0xa1   :  { %429 = vmatmul.f32.gmra.mxu1 %v65_v54 }
  0xa6   :  { %v1228_v57 = vpop.f32.mrf.mxu1  ;;  %v228_v6 = vpop.f32.mrf.mxu0 }
  0xa7   :  { %v229_v33 = vadd.f32 %v1281_v26, %v228_v6 }
  0xa8   :  { %v301_v58 = vpop.f32.mrf.mxu2 }
  0xa9   :  { %432 = vmatmul.f32.gmra.mxu1 %v73_v56 }
  0xaa   :  { %v339_v59 = vpop.f32.mrf.mxu3 }
  0xae   :  { %v1230_v60 = vpop.f32.mrf.mxu1  ;;  %v231_v12 = vpop.f32.mrf.mxu0 }
  0xaf   :  { %v232_v40 = vadd.f32 %v1281_v26, %v231_v12 }
  0xb2   :  { %v304_v61 = vpop.f32.mrf.mxu2 }
  0xb6   :  { %v1232_v62 = vpop.f32.mrf.mxu3  ;;  %v234_v21 = vpop.f32.mrf.mxu0 }
  0xb7   :  { %v235_v51 = vadd.f32 %v1281_v26, %v234_v21 }
  0xba   :  { %v1237_v2 = vpop.f32.mrf.mxu2 }
  0xbe   :  { %v263_v1 = vpop.f32.mrf.mxu1  ;;  %v1239_v3 = vpop.f32.mrf.mxu3 }
  0xbf   :  { %v377_v28 = vpop.f32.mrf.mxu0  ;;  %v264_v30 = vadd.f32 %v263_v1, %v226_v27 }
  0xc1   :  { %v302_v34 = vadd.f32 %v301_v58, %v264_v30  ;;  %v241_v30 = vadd.f32 %v1281_v26, %v1228_v57 }
  0xc2   :  { %v1244_v7 = vpop.f32.mrf.mxu2 }
  0xc3   :  { %v340_v37 = vadd.f32 %v339_v59, %v302_v34 }
  0xc5   :  { %v378_v41 = vadd.f32 %v377_v28, %v340_v37 }
  0xc6   :  { %v266_v5 = vpop.f32.mrf.mxu1  ;;  %v1246_v8 = vpop.f32.mrf.mxu3 }
  0xc7   :  { %v380_v36 = vpop.f32.mrf.mxu0  ;;  %v267_v38 = vadd.f32 %v266_v5, %v229_v33 }
  0xc9   :  { %v305_v42 = vadd.f32 %v304_v61, %v267_v38 }
  0xca   :  { %v1251_v11 = vpop.f32.mrf.mxu2 }
  0xcb   :  { %v343_v46 = vadd.f32 %v1232_v62, %v305_v42 }
  0xcd   :  { %v381_v52 = vadd.f32 %v380_v36, %v343_v46 }
  0xce   :  { %v269_v10 = vpop.f32.mrf.mxu1  ;;  %v1253_v13 = vpop.f32.mrf.mxu3 }
  0xcf   :  { %v270_v47 = vadd.f32 %v269_v10, %v232_v40  ;;  %v383_v49 = vpop.f32.mrf.mxu0 }
  0xd1   :  { %v308_v53 = vadd.f32 %v1237_v2, %v270_v47  ;;  %v238_v2 = vadd.f32 %v1281_v26, %v1223_v55 }
  0xd2   :  { %v1261_v17 = vpop.f32.mrf.mxu2 }
  0xd3   :  { %v346_v63 = vadd.f32 %v1239_v3, %v308_v53 }
  0xd5   :  { %v384_v5 = vadd.f32 %v383_v49, %v346_v63 }
  0xd6   :  { %v272_v15 = vpop.f32.mrf.mxu1  ;;  %v1266_v19 = vpop.f32.mrf.mxu3 }
  0xd7   :  { %v273_v62 = vadd.f32 %v272_v15, %v235_v51  ;;  %v386_v4 = vpop.f32.mrf.mxu0 }
  0xd9   :  { %v311_v6 = vadd.f32 %v1244_v7, %v273_v62 }
  0xda   :  { %v1274_v24 = vpop.f32.mrf.mxu2 }
  0xdb   :  { %v349_v16 = vadd.f32 %v1246_v8, %v311_v6 }
  0xdd   :  { %v387_v21 = vadd.f32 %v386_v4, %v349_v16 }
  0xde   :  { %v275_v23 = vpop.f32.mrf.mxu1  ;;  %v1276_v25 = vpop.f32.mrf.mxu3 }
  0xdf   :  { %v276_v18 = vadd.f32 %v275_v23, %v238_v2  ;;  %v389_v7 = vpop.f32.mrf.mxu0 }
  0xe1   :  { %v314_v22 = vadd.f32 %v1251_v11, %v276_v18 }
  0xe2   :  { %v453_v31 = vpop.f32.mrf.mxu2 }
  0xe6   :  { %v278_v29 = vpop.f32.mrf.mxu1  ;;  %v491_v32 = vpop.f32.mrf.mxu3 }
  0xe7   :  { %v392_v57 = vpop.f32.mrf.mxu0 }
  0xea   :  { %v456_v39 = vpop.f32.mrf.mxu2 }
  0xee   :  { %v1285_v35 = vpop.f32.mrf.mxu1  ;;  %v494_v44 = vpop.f32.mrf.mxu3 }
  0xef   :  { %v395_v49 = vpop.f32.mrf.mxu0 }
  0xf2   :  { %v459_v58 = vpop.f32.mrf.mxu2 }
  0xf6   :  { %v415_v43 = vpop.f32.mrf.mxu1  ;;  %v497_v61 = vpop.f32.mrf.mxu3 }
  0xf7   :  { %v416_v45 = vadd.f32 %v415_v43, %v378_v41 }
  0xf9   :  { %v454_v48 = vadd.f32 %v453_v31, %v416_v45  ;;  %v352_v31 = vadd.f32 %v1253_v13, %v314_v22 }
  0xfa   :  { %v462_v14 = vpop.f32.mrf.mxu2 }
  0xfb   :  { %v492_v50 = vadd.f32 %v491_v32, %v454_v48  ;;  %v279_v32 = vadd.f32 %v278_v29, %v241_v30  ;;  %v390_v36 = vadd.f32 %v389_v7, %v352_v31 }
  0xfd   :  { %v512_v54 = vmax.f32 %v492_v50, 0.0  ;;  %v317_v37 = vadd.f32 %v1261_v17, %v279_v32 }
  0xfe   :  { %v418_v56 = vpop.f32.mrf.mxu1  ;;  %v500_v15 = vpop.f32.mrf.mxu3 }
  0xff   :  { %v419_v59 = vadd.f32 %v418_v56, %v381_v52  ;;  %611 = vmatmul.msk.f32.vlgmr.msra.gmra.mxu0 %vm531_vm0, %v512_v54  ;;  %v355_v41 = vadd.f32 %v1266_v19, %v317_v37 }
 0x101   :  { %v457_v0 = vadd.f32 %v456_v39, %v419_v59  ;;  %v244_v39 = vadd.f32 %v1281_v26, %v1230_v60 }
 0x102   :  { %v465_v23 = vpop.f32.mrf.mxu2 }
 0x103   :  { %v495_v1 = vadd.f32 %v494_v44, %v457_v0  ;;  %v282_v13 = vadd.f32 %v1285_v35, %v244_v39  ;;  %v393_v44 = vadd.f32 %v392_v57, %v355_v41 }
 0x105   :  { %v513_v9 = vmax.f32 %v495_v1, 0.0  ;;  %v320_v45 = vadd.f32 %v1274_v24, %v282_v13 }
 0x106   :  { %v421_v10 = vpop.f32.mrf.mxu1  ;;  %v503_v34 = vpop.f32.mrf.mxu3 }
 0x107   :  { %v422_v12 = vadd.f32 %v421_v10, %v384_v5  ;;  %612 = vmatmul.msk.f32.gmra.mxu0 %vm531_vm0, %v513_v9  ;;  %v358_v60 = vadd.f32 %v1276_v25, %v320_v45  ;;  %v643_v25 = vld [vmem:[%s1347_s4] ss:$0 sm:$0xff] }
 0x109   :  { %v460_v3 = vadd.f32 %v459_v58, %v422_v12  ;;  %v396_v19 = vadd.f32 %v395_v49, %v358_v60 }
 0x10a   :  { %v468_v43 = vpop.f32.mrf.mxu2 }
 0x10b   :  { %v498_v20 = vadd.f32 %v497_v61, %v460_v3 }
 0x10d   :  { %v514_v27 = vmax.f32 %v498_v20, 0.0 }
 0x10e   :  { %v424_v28 = vpop.f32.mrf.mxu1  ;;  %v506_v47 = vpop.f32.mrf.mxu3 }
 0x10f   :  { %v425_v55 = vadd.f32 %v424_v28, %v387_v21  ;;  %613 = vmatmul.msk.f32.gmra.mxu0 %vm531_vm0, %v514_v27 }
 0x111   :  { %v463_v8 = vadd.f32 %v462_v14, %v425_v55 }
 0x112   :  { %v471_v52 = vpop.f32.mrf.mxu2 }
 0x113   :  { %v501_v33 = vadd.f32 %v500_v15, %v463_v8 }
 0x115   :  { %v515_v11 = vmax.f32 %v501_v33, 0.0 }
 0x116   :  { %v427_v38 = vpop.f32.mrf.mxu1  ;;  %v509_v54 = vpop.f32.mrf.mxu3 }
 0x117   :  { %v428_v40 = vadd.f32 %v427_v38, %v390_v36  ;;  %614 = vmatmul.msk.f32.gmra.mxu0 %vm531_vm0, %v515_v11 }
 0x119   :  { %v466_v29 = vadd.f32 %v465_v23, %v428_v40 }
 0x11b   :  { %v504_v42 = vadd.f32 %v503_v34, %v466_v29 }
 0x11d   :  { %v516_v17 = vmax.f32 %v504_v42, 0.0 }
 0x11e   :  { %v430_v46 = vpop.f32.mrf.mxu1 }
 0x11f   :  { %v431_v48 = vadd.f32 %v430_v46, %v393_v44  ;;  %615 = vmatmul.msk.f32.gmra.mxu0 %vm531_vm0, %v516_v17 }
 0x121   :  { %v469_v26 = vadd.f32 %v468_v43, %v431_v48 }
 0x123   :  { %v507_v50 = vadd.f32 %v506_v47, %v469_v26 }
 0x125   :  { %v517_v51 = vmax.f32 %v507_v50, 0.0 }
 0x126   :  { %v433_v35 = vpop.f32.mrf.mxu1 }
 0x127   :  { %v434_v53 = vadd.f32 %v433_v35, %v396_v19  ;;  %616 = vmatmul.msk.f32.vlgmr.msra.gmra.mxu2 %vm531_vm0, %v517_v51 }
 0x129   :  { %v472_v24 = vadd.f32 %v471_v52, %v434_v53 }
 0x12b   :  { %v510_v56 = vadd.f32 %v509_v54, %v472_v24 }
 0x12d   :  { %v518_v58 = vmax.f32 %v510_v56, 0.0 }
 0x12f   :  { %617 = vmatmul.msk.f32.gmra.mxu2 %vm531_vm0, %v518_v58 }
 0x17c   :  { %v570_v59 = vpop.f32.mrf.mxu0 }
 0x17d   :  { %v571_v61 = vadd.f32 %v643_v25, %v570_v59 }
 0x17f   :  { %v591_v63 = vmax.f32 %v571_v61, 0.0 }
 0x181   :  { %599 = vst.msk [vmem:[%s1349_s5] sm:$0xff] %vm598_vm1, %v591_v63 }
 0x184   :  { %v573_v62 = vpop.f32.mrf.mxu0 }
 0x185   :  { %v574_v0 = vadd.f32 %v643_v25, %v573_v62 }
 0x187   :  { %v592_v1 = vmax.f32 %v574_v0, 0.0 }
 0x189   :  { %600 = vst.msk [vmem:[%s1349_s5 + $0x8] sm:$0xff] %vm598_vm1, %v592_v1 }
 0x18c   :  { %v576_v4 = vpop.f32.mrf.mxu0 }
 0x18d   :  { %v577_v5 = vadd.f32 %v643_v25, %v576_v4 }
 0x18f   :  { %v593_v6 = vmax.f32 %v577_v5, 0.0 }
 0x191   :  { %601 = vst.msk [vmem:[%s1349_s5 + $0x10] sm:$0xff] %vm598_vm1, %v593_v6 }
 0x194   :  { %v579_v9 = vpop.f32.mrf.mxu0 }
 0x195   :  { %v580_v10 = vadd.f32 %v643_v25, %v579_v9 }
 0x197   :  { %v594_v2 = vmax.f32 %v580_v10, 0.0 }
 0x199   :  { %602 = vst.msk [vmem:[%s1349_s5 + $0x18] sm:$0xff] %vm598_vm1, %v594_v2 }
 0x19c   :  { %v582_v12 = vpop.f32.mrf.mxu0 }
 0x19d   :  { %v583_v14 = vadd.f32 %v643_v25, %v582_v12 }
 0x19f   :  { %v595_v16 = vmax.f32 %v583_v14, 0.0 }
 0x1a1   :  { %603 = vst.msk [vmem:[%s1349_s5 + $0x20] sm:$0xff] %vm598_vm1, %v595_v16 }
 0x1aa   :  { %v585_v18 = vpop.f32.mrf.mxu2 }
 0x1ab   :  { %v586_v3 = vadd.f32 %v643_v25, %v585_v18 }
 0x1ad   :  { %v596_v15 = vmax.f32 %v586_v3, 0.0 }
 0x1af   :  { %604 = vst.msk [vmem:[%s1349_s5 + $0x28] sm:$0xff] %vm598_vm1, %v596_v15 }
 0x1b2   :  { %v588_v20 = vpop.f32.mrf.mxu2 }
 0x1b3   :  { %v589_v21 = vadd.f32 %v643_v25, %v588_v20 }
 0x1b5   :  { %v597_v22 = vmax.f32 %v589_v21, 0.0 }
 0x1b7   :  { %606 = vst.msk [vmem:[%s1349_s5 + $0x30] sm:$0x3] %vm605_vm2, %v597_v22 }

// kernel: r2d2_forward.3
= control target key start
LH: loop header
LB: loop body
LE: loop exit
PB: predicated region body
PF: predicated region fallthrough
CT: control target
= control target key end

     0   :  { %s1744_s0 = inlined_call_operand.vmem [shape: f32[2,400], index: 0, kind: input, shape index: {}]   ;;  %s1745_s1 = inlined_call_operand.vmem [shape: f32[2,128], index: 1, kind: input, shape index: {}]   ;;  %s1746_s2 = inlined_call_operand.vmem [shape: f32[2,128], index: 2, kind: input, shape index: {}]   ;;  %s1747_s3 = inlined_call_operand.vmem [shape: f32[400,128], index: 3, kind: input, shape index: {}]   ;;  %s1748_s4 = inlined_call_operand.vmem [shape: f32[1,128], index: 4, kind: input, shape index: {}]   ;;  %s1749_s5 = inlined_call_operand.vmem [shape: f32[256,512], index: 5, kind: input, shape index: {}]   ;;  %s1750_s6 = inlined_call_operand.vmem [shape: f32[1,512], index: 6, kind: input, shape index: {}]   ;;  %s1751_s7 = inlined_call_operand.vmem [shape: f32[128,64], index: 7, kind: input, shape index: {}]   ;;  %s1752_s8 = inlined_call_operand.vmem [shape: f32[1,64], index: 8, kind: input, shape index: {}]   ;;  %s1753_s9 = inlined_call_operand.vmem [shape: f32[64,1], index: 9, kind: input, shape index: {}]   ;;  %s1754_s10 = inlined_call_operand.<no memory space> [shape: f32[1,1], index: 10, kind: input, shape index: {}]   ;;  %s1755_s11 = inlined_call_operand.vmem [shape: f32[128,64], index: 11, kind: input, shape index: {}]   ;;  %s1756_s12 = inlined_call_operand.vmem [shape: f32[1,64], index: 12, kind: input, shape index: {}]   ;;  %s1757_s13 = inlined_call_operand.vmem [shape: f32[64,18], index: 13, kind: input, shape index: {}]   ;;  %s1758_s14 = inlined_call_operand.vmem [shape: f32[1,18], index: 14, kind: input, shape index: {}]   ;;  %s1759_s15 = inlined_call_operand.hbm [shape: f32[2,18], index: 15, kind: output, shape index: {0}]   ;;  %s1760_s16 = inlined_call_operand.hbm [shape: f32[2,128], index: 16, kind: output, shape index: {1}]   ;;  %s1761_s17 = inlined_call_operand.hbm [shape: f32[2,128], index: 17, kind: output, shape index: {2}]  }
   0x1   :  { %1762 = sst [smem:[#allocation10_spill]] %s1744_s0  ;;  %v23_v0 = vstv %s1754_s10 }
   0x2   :  { %1763 = sst [smem:[#allocation11_spill]] %s1745_s1  ;;  %24 = vst [vmem:[#allocation2] sm:$0x1] %v23_v0 }
   0x3   :  { %25 = vsyncpa [#allocation4], 0  ;;  %v105_v1 = vld [vmem:[%s1747_s3 + $0x178] sm:$0xff]  ;;  %v104_v3 = vld [vmem:[%s1747_s3 + $0x170] sm:$0xff]  ;;  %s1764_s20 = sld [smem:[#allocation10_spill]]  ;;  %vm121_vm0 = vcmask 130048  }
   0x4   :  { %v73_v2 = vld [vmem:[%s1747_s3 + $0x78] sm:$0xff]  ;;  %164 = vmatpush.msra.mxu2 %v105_v1  ;;  %v72_v4 = vld [vmem:[%s1747_s3 + $0x70] sm:$0xff]  ;;  %v103_v6 = vld [vmem:[%s1747_s3 + $0x168] sm:$0xff] }
   0x5   :  { %124 = vmatpush.msra.mxu0 %v73_v2  ;;  %v89_v5 = vld [vmem:[%s1747_s3 + $0xf8] sm:$0xff]  ;;  %v71_v7 = vld [vmem:[%s1747_s3 + $0x68] sm:$0xff]  ;;  %v88_v8 = vld [vmem:[%s1747_s3 + $0xf0] sm:$0xff] }
   0x6   :  { %144 = vmatpush.msra.mxu1 %v89_v5  ;;  %165 = vmatpush.msra.mxu2 %v104_v3  ;;  %v87_v9 = vld [vmem:[%s1747_s3 + $0xe8] sm:$0xff]  ;;  %v102_v10 = vld [vmem:[%s1747_s3 + $0x160] sm:$0xff]  ;;  %v101_v13 = vld [vmem:[%s1747_s3 + $0x158] sm:$0xff] }
   0x7   :  { %125 = vmatpush.msra.mxu0 %v72_v4  ;;  %v70_v11 = vld [vmem:[%s1747_s3 + $0x60] sm:$0xff]  ;;  %v69_v14 = vld [vmem:[%s1747_s3 + $0x58] sm:$0xff]  ;;  %v100_v16 = vld [vmem:[%s1747_s3 + $0x150] sm:$0xff] }
   0x8   :  { %145 = vmatpush.msra.mxu1 %v88_v8  ;;  %166 = vmatpush.msra.mxu2 %v103_v6  ;;  %v86_v12 = vld [vmem:[%s1747_s3 + $0xe0] sm:$0xff]  ;;  %v85_v15 = vld [vmem:[%s1747_s3 + $0xd8] sm:$0xff]  ;;  %v68_v17 = vld [vmem:[%s1747_s3 + $0x50] sm:$0xff] }
   0x9   :  { %126 = vmatpush.msra.mxu0 %v71_v7  ;;  %v84_v18 = vld [vmem:[%s1747_s3 + $0xd0] sm:$0xff]  ;;  %v99_v19 = vld [vmem:[%s1747_s3 + $0x148] sm:$0xff]  ;;  %v98_v22 = vld [vmem:[%s1747_s3 + $0x140] sm:$0xff] }
   0xa   :  { %146 = vmatpush.msra.mxu1 %v87_v9  ;;  %167 = vmatpush.msra.mxu2 %v102_v10  ;;  %v67_v20 = vld [vmem:[%s1747_s3 + $0x48] sm:$0xff]  ;;  %v66_v23 = vld [vmem:[%s1747_s3 + $0x40] sm:$0xff]  ;;  %v97_v25 = vld [vmem:[%s1747_s3 + $0x138] sm:$0xff] }
   0xb   :  { %127 = vmatpush.msra.mxu0 %v70_v11  ;;  %v83_v21 = vld [vmem:[%s1747_s3 + $0xc8] sm:$0xff]  ;;  %v82_v24 = vld [vmem:[%s1747_s3 + $0xc0] sm:$0xff]  ;;  %v65_v26 = vld [vmem:[%s1747_s3 + $0x38] sm:$0xff] }
   0xc   :  { %147 = vmatpush.msra.mxu1 %v86_v12  ;;  %168 = vmatpush.msra.mxu2 %v101_v13  ;;  %v81_v27 = vld [vmem:[%s1747_s3 + $0xb8] sm:$0xff]  ;;  %v107_v28 = vld [vmem:[%s1747_s3 + $0x188] sm:$0xff]  ;;  %v57_v29 = vld [vmem:[%s1764_s20] sm:$0xff] }
   0xd   :  { %128 = vmatpush.msra.mxu0 %v69_v14  ;;  %v96_v30 = vld [vmem:[%s1747_s3 + $0x130] sm:$0xff]  ;;  %198 = vmatpush.msra.mxu3 %v107_v28  ;;  %113 = vst [vmem:[#allocation1] ss:$4 sm:$0xff] %v57_v29  ;;  %v106_v32 = vld [vmem:[%s1747_s3 + $0x180] sm:$0xff]  ;;  %v95_v35 = vld [vmem:[%s1747_s3 + $0x128] sm:$0xff] }
   0xe   :  { %148 = vmatpush.msra.mxu1 %v85_v15  ;;  %169 = vmatpush.msra.mxu2 %v100_v16  ;;  %v64_v31 = vld [vmem:[%s1747_s3 + $0x30] sm:$0xff]  ;;  %v265_v34 = vld [vmem:[%s1749_s5 + $0x1e0] sm:$0xff]  ;;  %v63_v36 = vld [vmem:[%s1747_s3 + $0x28] sm:$0xff] }
   0xf   :  { %129 = vmatpush.msra.mxu0 %v68_v17  ;;  %v80_v33 = vld [vmem:[%s1747_s3 + $0xb0] sm:$0xff]  ;;  %199 = vmatpush.msra.mxu3 %v106_v32  ;;  %v79_v37 = vld [vmem:[%s1747_s3 + $0xa8] sm:$0xff]  ;;  %v261_v38 = vld [vmem:[%s1749_s5 + $0x1c0] sm:$0xff] }
  0x10   :  { %149 = vmatpush.msra.mxu1 %v84_v18  ;;  %170 = vmatpush.msra.mxu2 %v99_v19  ;;  %v94_v39 = vld [vmem:[%s1747_s3 + $0x120] sm:$0xff]  ;;  %v93_v43 = vld [vmem:[%s1747_s3 + $0x118] sm:$0xff]  ;;  %v92_v46 = vld [vmem:[%s1747_s3 + $0x110] sm:$0xff] }
  0x11   :  { %130 = vmatpush.msra.mxu0 %v67_v20  ;;  %v62_v40 = vld [vmem:[%s1747_s3 + $0x20] sm:$0xff]  ;;  %343 = vmatpush.msrb.mxu3 %v265_v34  ;;  %v61_v44 = vld [vmem:[%s1747_s3 + $0x18] sm:$0xff]  ;;  %v60_v47 = vld [vmem:[%s1747_s3 + $0x10] sm:$0xff] }
  0x12   :  { %150 = vmatpush.msra.mxu1 %v83_v21  ;;  %171 = vmatpush.msra.mxu2 %v98_v22  ;;  %v78_v41 = vld [vmem:[%s1747_s3 + $0xa0] sm:$0xff]  ;;  %v77_v45 = vld [vmem:[%s1747_s3 + $0x98] sm:$0xff]  ;;  %v76_v49 = vld [vmem:[%s1747_s3 + $0x90] sm:$0xff] }
  0x13   :  { %131 = vmatpush.msra.mxu0 %v66_v23  ;;  %v257_v42 = vld [vmem:[%s1749_s5 + $0x1a0] sm:$0xff]  ;;  %344 = vmatpush.msrb.mxu3 %v261_v38  ;;  %v91_v51 = vld [vmem:[%s1747_s3 + $0x108] sm:$0xff] }
  0x14   :  { %151 = vmatpush.msra.mxu1 %v82_v24  ;;  %172 = vmatpush.msra.mxu2 %v97_v25  ;;  %v117_v48 = vld.sshfl [vmem:[#allocation1 + $0x18] sm:$0xff pattern:$0x73625140]  ;;  %v253_v50 = vld [vmem:[%s1749_s5 + $0x180] sm:$0xff]  ;;  %v59_v52 = vld [vmem:[%s1747_s3 + $0x8] sm:$0xff] }
  0x15   :  { %132 = vmatpush.msra.mxu0 %v65_v26  ;;  %345 = vmatpush.msrb.mxu3 %v257_v42  ;;  %v75_v53 = vld [vmem:[%s1747_s3 + $0x88] sm:$0xff]  ;;  %v249_v54 = vld [vmem:[%s1749_s5 + $0x160] sm:$0xff]  ;;  %v116_v57 = vld.sshfl [vmem:[#allocation1 + $0x10] sm:$0xff pattern:$0x73625140] }
  0x16   :  { %152 = vmatpush.msra.mxu1 %v81_v27  ;;  %173 = vmatpush.msra.mxu2 %v96_v30  ;;  %v90_v55 = vld [vmem:[%s1747_s3 + $0x100] sm:$0xff]  ;;  %v330_v60 = vld [vmem:[%s1749_s5 + $0x3e8] sm:$0xff] }
  0x17   :  { %133 = vmatpush.msra.mxu0 %v64_v31  ;;  %798 = vmatmul.msk.f32.vlgmr.msra.gmra.mxu3 %vm121_vm0, %v117_v48  ;;  %v58_v56 = vld [vmem:[%s1747_s3] sm:$0xff]  ;;  %v115_v61 = vld.sshfl [vmem:[#allocation1 + $0x8] sm:$0xff pattern:$0x73625140] }
  0x18   :  { %153 = vmatpush.msra.mxu1 %v80_v33  ;;  %174 = vmatpush.msra.mxu2 %v95_v35  ;;  %v114_v58 = vld.sshfl [vmem:[#allocation1] sm:$0xff pattern:$0x73625140]  ;;  %v326_v63 = vld [vmem:[%s1749_s5 + $0x3c8] sm:$0xff] }
  0x19   :  { %134 = vmatpush.msra.mxu0 %v63_v36  ;;  %346 = vmatpush.msrb.mxu3 %v253_v50  ;;  %v74_v59 = vld [vmem:[%s1747_s3 + $0x80] sm:$0xff]  ;;  %v266_v0 = vld [vmem:[%s1749_s5 + $0x1e8] sm:$0xff] }
  0x1a   :  { %154 = vmatpush.msra.mxu1 %v79_v37  ;;  %175 = vmatpush.msra.mxu2 %v94_v39  ;;  %v329_v62 = vld [vmem:[%s1749_s5 + $0x3e0] sm:$0xff]  ;;  %v322_v3 = vld [vmem:[%s1749_s5 + $0x3a8] sm:$0xff] }
  0x1b   :  { %135 = vmatpush.msra.mxu0 %v62_v40  ;;  %347 = vmatpush.msrb.mxu3 %v249_v54  ;;  %v245_v1 = vld [vmem:[%s1749_s5 + $0x140] sm:$0xff]  ;;  %v262_v4 = vld [vmem:[%s1749_s5 + $0x1c8] sm:$0xff] }
  0x1c   :  { %155 = vmatpush.msra.mxu1 %v78_v41  ;;  %176 = vmatpush.msra.mxu2 %v93_v43  ;;  %v325_v2 = vld [vmem:[%s1749_s5 + $0x3c0] sm:$0xff]  ;;  %v318_v7 = vld [vmem:[%s1749_s5 + $0x388] sm:$0xff] }
  0x1d   :  { %136 = vmatpush.msra.mxu0 %v61_v44  ;;  %v241_v5 = vld [vmem:[%s1749_s5 + $0x120] sm:$0xff]  ;;  %v258_v8 = vld [vmem:[%s1749_s5 + $0x1a8] sm:$0xff]  ;;  %348 = vmatpush.msrb.mxu3 %v245_v1 }
  0x1e   :  { %156 = vmatpush.msra.mxu1 %v77_v45  ;;  %177 = vmatpush.msra.mxu2 %v92_v46  ;;  %v321_v6 = vld [vmem:[%s1749_s5 + $0x3a0] sm:$0xff]  ;;  %v314_v11 = vld [vmem:[%s1749_s5 + $0x368] sm:$0xff] }
  0x1f   :  { %137 = vmatpush.msra.mxu0 %v60_v47  ;;  %v237_v9 = vld [vmem:[%s1749_s5 + $0x100] sm:$0xff]  ;;  %v254_v12 = vld [vmem:[%s1749_s5 + $0x188] sm:$0xff]  ;;  %349 = vmatpush.msrb.mxu3 %v241_v5 }
  0x20   :  { %157 = vmatpush.msra.mxu1 %v76_v49  ;;  %178 = vmatpush.msra.mxu2 %v91_v51  ;;  %v317_v10 = vld [vmem:[%s1749_s5 + $0x380] sm:$0xff]  ;;  %v310_v15 = vld [vmem:[%s1749_s5 + $0x348] sm:$0xff] }
  0x21   :  { %138 = vmatpush.msra.mxu0 %v59_v52  ;;  %v233_v13 = vld [vmem:[%s1749_s5 + $0xe0] sm:$0xff]  ;;  %v250_v16 = vld [vmem:[%s1749_s5 + $0x168] sm:$0xff]  ;;  %350 = vmatpush.msrb.mxu3 %v237_v9 }
  0x22   :  { %158 = vmatpush.msra.mxu1 %v75_v53  ;;  %179 = vmatpush.msra.mxu2 %v90_v55  ;;  %v313_v14 = vld [vmem:[%s1749_s5 + $0x360] sm:$0xff]  ;;  %v306_v19 = vld [vmem:[%s1749_s5 + $0x328] sm:$0xff] }
  0x23   :  { %139 = vmatpush.msra.mxu0 %v58_v56  ;;  %180 = vmatmul.f32.vlgmr.msra.gmra.mxu2 %v116_v57  ;;  %v229_v17 = vld [vmem:[%s1749_s5 + $0xc0] sm:$0xff]  ;;  %v246_v20 = vld [vmem:[%s1749_s5 + $0x148] sm:$0xff] }
  0x24   :  { %140 = vmatmul.f32.vlgmr.msra.gmra.mxu0 %v114_v58  ;;  %159 = vmatpush.msra.mxu1 %v74_v59  ;;  %v309_v18 = vld [vmem:[%s1749_s5 + $0x340] sm:$0xff]  ;;  %v302_v23 = vld [vmem:[%s1749_s5 + $0x308] sm:$0xff] }
  0x25   :  { %403 = vmatpush.msrb.mxu2 %v330_v60  ;;  %160 = vmatmul.f32.vlgmr.msra.gmra.mxu1 %v115_v61  ;;  %v225_v21 = vld [vmem:[%s1749_s5 + $0xa0] sm:$0xff]  ;;  %v242_v24 = vld [vmem:[%s1749_s5 + $0x128] sm:$0xff] }
  0x26   :  { %363 = vmatpush.msrb.mxu0 %v329_v62  ;;  %383 = vmatpush.msrb.mxu1 %v266_v0  ;;  %v305_v22 = vld [vmem:[%s1749_s5 + $0x320] sm:$0xff]  ;;  %v298_v27 = vld [vmem:[%s1749_s5 + $0x2e8] sm:$0xff] }
  0x27   :  { %404 = vmatpush.msrb.mxu2 %v326_v63  ;;  %351 = vmatpush.msrb.mxu3 %v233_v13  ;;  %v221_v25 = vld [vmem:[%s1749_s5 + $0x80] sm:$0xff]  ;;  %v238_v28 = vld [vmem:[%s1749_s5 + $0x108] sm:$0xff] }
  0x28   :  { %364 = vmatpush.msrb.mxu0 %v325_v2  ;;  %384 = vmatpush.msrb.mxu1 %v262_v4  ;;  %v301_v26 = vld [vmem:[%s1749_s5 + $0x300] sm:$0xff]  ;;  %v294_v29 = vld [vmem:[%s1749_s5 + $0x2c8] sm:$0xff] }
  0x29   :  { %405 = vmatpush.msrb.mxu2 %v322_v3  ;;  %352 = vmatpush.msrb.mxu3 %v229_v17  ;;  %v234_v30 = vld [vmem:[%s1749_s5 + $0xe8] sm:$0xff]  ;;  %v217_v31 = vld [vmem:[%s1749_s5 + $0x60] sm:$0xff] }
  0x2a   :  { %365 = vmatpush.msrb.mxu0 %v321_v6  ;;  %385 = vmatpush.msrb.mxu1 %v258_v8  ;;  %v297_v32 = vld [vmem:[%s1749_s5 + $0x2e0] sm:$0xff]  ;;  %v290_v33 = vld [vmem:[%s1749_s5 + $0x2a8] sm:$0xff] }
  0x2b   :  { %406 = vmatpush.msrb.mxu2 %v318_v7  ;;  %353 = vmatpush.msrb.mxu3 %v225_v21  ;;  %v230_v34 = vld [vmem:[%s1749_s5 + $0xc8] sm:$0xff]  ;;  %v213_v35 = vld [vmem:[%s1749_s5 + $0x40] sm:$0xff] }
  0x2c   :  { %366 = vmatpush.msrb.mxu0 %v317_v10  ;;  %386 = vmatpush.msrb.mxu1 %v254_v12  ;;  %v293_v36 = vld [vmem:[%s1749_s5 + $0x2c0] sm:$0xff] }
  0x2d   :  { %407 = vmatpush.msrb.mxu2 %v314_v11  ;;  %354 = vmatpush.msrb.mxu3 %v221_v25  ;;  %v209_v37 = vld [vmem:[%s1749_s5 + $0x20] sm:$0xff] }
  0x2e   :  { %367 = vmatpush.msrb.mxu0 %v313_v14  ;;  %387 = vmatpush.msrb.mxu1 %v250_v16  ;;  %v289_v38 = vld [vmem:[%s1749_s5 + $0x2a0] sm:$0xff] }
  0x2f   :  { %408 = vmatpush.msrb.mxu2 %v310_v15  ;;  %355 = vmatpush.msrb.mxu3 %v217_v31 }
  0x30   :  { %368 = vmatpush.msrb.mxu0 %v309_v18  ;;  %388 = vmatpush.msrb.mxu1 %v246_v20 }
  0x31   :  { %409 = vmatpush.msrb.mxu2 %v306_v19 }
  0x32   :  { %369 = vmatpush.msrb.mxu0 %v305_v22  ;;  %389 = vmatpush.msrb.mxu1 %v242_v24 }
  0x33   :  { %410 = vmatpush.msrb.mxu2 %v302_v23 }
  0x34   :  { %370 = vmatpush.msrb.mxu0 %v301_v26  ;;  %390 = vmatpush.msrb.mxu1 %v238_v28 }
  0x35   :  { %411 = vmatpush.msrb.mxu2 %v298_v27 }
  0x36   :  { %371 = vmatpush.msrb.mxu0 %v297_v32  ;;  %391 = vmatpush.msrb.mxu1 %v234_v30 }
  0x37   :  { %412 = vmatpush.msrb.mxu2 %v294_v29 }
  0x38   :  { %26 = vsyncpa [#allocation6], 0  ;;  %v286_v39 = vld [vmem:[%s1749_s5 + $0x288] sm:$0xff]  ;;  %356 = vmatpush.msrb.mxu3 %v213_v35  ;;  %372 = vmatpush.msrb.mxu0 %v293_v36  ;;  %v205_v41 = vld [vmem:[%s1749_s5] sm:$0xff]  ;;  %s1765_s1 = sld [smem:[#allocation11_spill]]  ;;  %vm622_vm13 = vcmask 523264  }
  0x39   :  { %v226_v40 = vld [vmem:[%s1749_s5 + $0xa8] sm:$0xff]  ;;  %413 = vmatpush.msrb.mxu2 %v290_v33  ;;  %392 = vmatpush.msrb.mxu1 %v230_v34  ;;  %v285_v42 = vld [vmem:[%s1749_s5 + $0x280] sm:$0xff]  ;;  %v267_v45 = vld [vmem:[%s1749_s5 + $0x1f0] sm:$0xff]  ;;  %vm722_vm14 = vcmask 140288   ;;  %s780_s24 = sshll.u32 %s1761_s17, 4  ;;  %s915_s25 = smov [#allocation7]   ;;  %s781_s24 = int_to_ptr.hbm [resolvable:$true] %s780_s24 }
  0x3a   :  { %v282_v43 = vld [vmem:[%s1749_s5 + $0x268] sm:$0xff]  ;;  %357 = vmatpush.msrb.mxu3 %v209_v37  ;;  %373 = vmatpush.msrb.mxu0 %v289_v38  ;;  %v281_v46 = vld [vmem:[%s1749_s5 + $0x260] sm:$0xff]  ;;  %v263_v49 = vld [vmem:[%s1749_s5 + $0x1d0] sm:$0xff]  ;;  %s917_s27 = smov [#allocation3]  }
  0x3b   :  { %v222_v44 = vld [vmem:[%s1749_s5 + $0x88] sm:$0xff]  ;;  %414 = vmatpush.msrb.mxu2 %v286_v39  ;;  %393 = vmatpush.msrb.mxu1 %v226_v40  ;;  %v277_v50 = vld [vmem:[%s1749_s5 + $0x240] sm:$0xff]  ;;  %v259_v53 = vld [vmem:[%s1749_s5 + $0x1b0] sm:$0xff]  ;;  %s756_s28 = sshll.u32 %s917_s27, 4  ;;  %s757_s28 = int_to_ptr.vmem [resolvable:$true] %s756_s28 }
  0x3c   :  { %v278_v47 = vld [vmem:[%s1749_s5 + $0x248] sm:$0xff]  ;;  %358 = vmatpush.msrb.mxu3 %v205_v41  ;;  %374 = vmatpush.msrb.mxu0 %v285_v42  ;;  %v273_v54 = vld [vmem:[%s1749_s5 + $0x220] sm:$0xff]  ;;  %v332_v57 = vld [vmem:[%s1749_s5 + $0x3f8] sm:$0xff] }
  0x3d   :  { %v218_v48 = vld [vmem:[%s1749_s5 + $0x68] sm:$0xff]  ;;  %415 = vmatpush.msrb.mxu2 %v282_v43  ;;  %394 = vmatpush.msrb.mxu1 %v222_v44  ;;  %v255_v58 = vld [vmem:[%s1749_s5 + $0x190] sm:$0xff]  ;;  %v269_v60 = vld [vmem:[%s1749_s5 + $0x200] sm:$0xff] }
  0x3e   :  { %v274_v51 = vld [vmem:[%s1749_s5 + $0x228] sm:$0xff]  ;;  %423 = vmatpush.msra.mxu3 %v267_v45  ;;  %375 = vmatpush.msrb.mxu0 %v281_v46  ;;  %v328_v61 = vld [vmem:[%s1749_s5 + $0x3d8] sm:$0xff]  ;;  %v251_v63 = vld [vmem:[%s1749_s5 + $0x170] sm:$0xff] }
  0x3f   :  { %v214_v52 = vld [vmem:[%s1749_s5 + $0x48] sm:$0xff]  ;;  %416 = vmatpush.msrb.mxu2 %v278_v47  ;;  %395 = vmatpush.msrb.mxu1 %v218_v48  ;;  %v268_v62 = vld [vmem:[%s1749_s5 + $0x1f8] sm:$0xff]  ;;  %v331_v0 = vld [vmem:[%s1749_s5 + $0x3f0] sm:$0xff] }
  0x40   :  { %v270_v55 = vld [vmem:[%s1749_s5 + $0x208] sm:$0xff]  ;;  %424 = vmatpush.msra.mxu3 %v263_v49  ;;  %376 = vmatpush.msrb.mxu0 %v277_v50  ;;  %v324_v1 = vld [vmem:[%s1749_s5 + $0x3b8] sm:$0xff]  ;;  %v247_v3 = vld [vmem:[%s1749_s5 + $0x150] sm:$0xff] }
  0x41   :  { %v210_v56 = vld [vmem:[%s1749_s5 + $0x28] sm:$0xff]  ;;  %417 = vmatpush.msrb.mxu2 %v274_v51  ;;  %396 = vmatpush.msrb.mxu1 %v214_v52  ;;  %v264_v2 = vld [vmem:[%s1749_s5 + $0x1d8] sm:$0xff]  ;;  %v327_v4 = vld [vmem:[%s1749_s5 + $0x3d0] sm:$0xff] }
  0x42   :  { %v206_v59 = vld [vmem:[%s1749_s5 + $0x8] sm:$0xff]  ;;  %425 = vmatpush.msra.mxu3 %v259_v53  ;;  %377 = vmatpush.msrb.mxu0 %v273_v54  ;;  %v320_v5 = vld [vmem:[%s1749_s5 + $0x398] sm:$0xff]  ;;  %v243_v7 = vld [vmem:[%s1749_s5 + $0x130] sm:$0xff] }
  0x43   :  { %418 = vmatpush.msrb.mxu2 %v270_v55  ;;  %397 = vmatpush.msrb.mxu1 %v210_v56  ;;  %v260_v6 = vld [vmem:[%s1749_s5 + $0x1b8] sm:$0xff]  ;;  %v323_v8 = vld [vmem:[%s1749_s5 + $0x3b0] sm:$0xff]  ;;  %v204_v30 = vld [vmem:[%s1765_s1] sm:$0x3] }
  0x44   :  { %426 = vmatpush.msra.mxu3 %v255_v58  ;;  %378 = vmatpush.msrb.mxu0 %v269_v60  ;;  %v316_v9 = vld [vmem:[%s1749_s5 + $0x378] sm:$0xff]  ;;  %v239_v18 = vld [vmem:[%s1749_s5 + $0x110] sm:$0xff] }
  0x45   :  { %483 = vmatpush.msra.mxu2 %v332_v57  ;;  %398 = vmatpush.msrb.mxu1 %v206_v59  ;;  %v256_v10 = vld [vmem:[%s1749_s5 + $0x198] sm:$0xff]  ;;  %v319_v19 = vld [vmem:[%s1749_s5 + $0x390] sm:$0xff]  ;;  %v814_v57 = vld [vmem:[%s1748_s4] ss:$0 sm:$0xff]  ;;  %s778_s4 = sshll.u32 %s915_s25, 4  ;;  %s779_s4 = int_to_ptr.vmem [resolvable:$true] %s778_s4 }
  0x46   :  { %427 = vmatpush.msra.mxu3 %v251_v63  ;;  %443 = vmatpush.msra.mxu0 %v331_v0  ;;  %v312_v11 = vld [vmem:[%s1749_s5 + $0x358] sm:$0xff]  ;;  %v235_v22 = vld [vmem:[%s1749_s5 + $0xf0] sm:$0xff] }
  0x47   :  { %484 = vmatpush.msra.mxu2 %v328_v61  ;;  %463 = vmatpush.msra.mxu1 %v268_v62  ;;  %v252_v12 = vld [vmem:[%s1749_s5 + $0x178] sm:$0xff]  ;;  %v315_v23 = vld [vmem:[%s1749_s5 + $0x370] sm:$0xff] }
  0x48   :  { %428 = vmatpush.msra.mxu3 %v247_v3  ;;  %444 = vmatpush.msra.mxu0 %v327_v4  ;;  %v308_v13 = vld [vmem:[%s1749_s5 + $0x338] sm:$0xff]  ;;  %v231_v26 = vld [vmem:[%s1749_s5 + $0xd0] sm:$0xff] }
  0x49   :  { %485 = vmatpush.msra.mxu2 %v324_v1  ;;  %464 = vmatpush.msra.mxu1 %v264_v2  ;;  %v248_v14 = vld [vmem:[%s1749_s5 + $0x158] sm:$0xff]  ;;  %v311_v27 = vld [vmem:[%s1749_s5 + $0x350] sm:$0xff] }
  0x4a   :  { %429 = vmatpush.msra.mxu3 %v243_v7  ;;  %445 = vmatpush.msra.mxu0 %v323_v8  ;;  %v304_v15 = vld [vmem:[%s1749_s5 + $0x318] sm:$0xff]  ;;  %v227_v31 = vld [vmem:[%s1749_s5 + $0xb0] sm:$0xff]  ;;  %v659_v7 = vld [vmem:[%s1755_s11 + $0x68] sm:$0xff] }
  0x4b   :  { %486 = vmatpush.msra.mxu2 %v320_v5  ;;  %465 = vmatpush.msra.mxu1 %v260_v6  ;;  %v244_v16 = vld [vmem:[%s1749_s5 + $0x138] sm:$0xff]  ;;  %v307_v32 = vld [vmem:[%s1749_s5 + $0x330] sm:$0xff]  ;;  %v582_v6 = vld [vmem:[%s1751_s7 + $0x68] sm:$0xff] }
  0x4c   :  { %v300_v17 = vld [vmem:[%s1749_s5 + $0x2f8] sm:$0xff]  ;;  %430 = vmatpush.msra.mxu3 %v239_v18  ;;  %446 = vmatpush.msra.mxu0 %v319_v19  ;;  %v223_v35 = vld [vmem:[%s1749_s5 + $0x90] sm:$0xff]  ;;  %v1575_v8 = vld [vmem:[%s1750_s6] sm:$0xf]  ;;  %s914_s6 = smov [#allocation5]  }
  0x4d   :  { %487 = vmatpush.msra.mxu2 %v316_v9  ;;  %466 = vmatpush.msra.mxu1 %v256_v10  ;;  %v240_v20 = vld [vmem:[%s1749_s5 + $0x118] sm:$0xff]  ;;  %v303_v36 = vld [vmem:[%s1749_s5 + $0x310] sm:$0xff]  ;;  %v581_v9 = vld [vmem:[%s1751_s7 + $0x60] sm:$0xff]  ;;  %s767_s23 = sshll.u32 %s914_s6, 4  ;;  %s768_s23 = int_to_ptr.vmem [resolvable:$true] %s767_s23 }
  0x4e   :  { %v296_v21 = vld [vmem:[%s1749_s5 + $0x2d8] sm:$0xff]  ;;  %431 = vmatpush.msra.mxu3 %v235_v22  ;;  %447 = vmatpush.msra.mxu0 %v315_v23  ;;  %v219_v39 = vld [vmem:[%s1749_s5 + $0x70] sm:$0xff]  ;;  %v658_v10 = vld [vmem:[%s1755_s11 + $0x60] sm:$0xff]  ;;  %v335_v22 = vperm.slane %v1575_v8, 0 }
  0x4f   :  { %488 = vmatpush.msra.mxu2 %v312_v11  ;;  %467 = vmatpush.msra.mxu1 %v252_v12  ;;  %v236_v24 = vld [vmem:[%s1749_s5 + $0xf8] sm:$0xff]  ;;  %v299_v40 = vld [vmem:[%s1749_s5 + $0x2f0] sm:$0xff]  ;;  %v336_v11 = vperm.slane %v1575_v8, 1  ;;  %v578_v19 = vld [vmem:[%s1751_s7 + $0x48] sm:$0xff] }
  0x50   :  { %v292_v25 = vld [vmem:[%s1749_s5 + $0x2b8] sm:$0xff]  ;;  %432 = vmatpush.msra.mxu3 %v231_v26  ;;  %448 = vmatpush.msra.mxu0 %v311_v27  ;;  %v215_v43 = vld [vmem:[%s1749_s5 + $0x50] sm:$0xff]  ;;  %v577_v23 = vld [vmem:[%s1751_s7 + $0x40] sm:$0xff]  ;;  %v338_v26 = vperm.slane %v1575_v8, 3 }
  0x51   :  { %489 = vmatpush.msra.mxu2 %v308_v13  ;;  %468 = vmatpush.msra.mxu1 %v248_v14  ;;  %v232_v28 = vld [vmem:[%s1749_s5 + $0xd8] sm:$0xff]  ;;  %v295_v44 = vld [vmem:[%s1749_s5 + $0x2d0] sm:$0xff] }
  0x52   :  { %v288_v29 = vld [vmem:[%s1749_s5 + $0x298] sm:$0xff]  ;;  %419 = vmatmul.f32.vlgmr.msrb.gmra.mxu2 %v204_v30  ;;  %433 = vmatpush.msra.mxu3 %v227_v31  ;;  %v211_v47 = vld [vmem:[%s1749_s5 + $0x30] sm:$0xff] }
  0x53   :  { %490 = vmatpush.msra.mxu2 %v304_v15  ;;  %469 = vmatpush.msra.mxu1 %v244_v16  ;;  %v228_v33 = vld [vmem:[%s1749_s5 + $0xb8] sm:$0xff]  ;;  %v291_v48 = vld [vmem:[%s1749_s5 + $0x2b0] sm:$0xff] }
  0x54   :  { %v284_v34 = vld [vmem:[%s1749_s5 + $0x278] sm:$0xff]  ;;  %449 = vmatpush.msra.mxu0 %v307_v32  ;;  %434 = vmatpush.msra.mxu3 %v223_v35  ;;  %v207_v50 = vld [vmem:[%s1749_s5 + $0x10] sm:$0xff] }
  0x55   :  { %491 = vmatpush.msra.mxu2 %v300_v17  ;;  %470 = vmatpush.msra.mxu1 %v240_v20  ;;  %v224_v37 = vld [vmem:[%s1749_s5 + $0x98] sm:$0xff]  ;;  %v287_v51 = vld [vmem:[%s1749_s5 + $0x290] sm:$0xff]  ;;  %v655_v20 = vld [vmem:[%s1755_s11 + $0x48] sm:$0xff] }
  0x56   :  { %v280_v38 = vld [vmem:[%s1749_s5 + $0x258] sm:$0xff]  ;;  %450 = vmatpush.msra.mxu0 %v303_v36  ;;  %435 = vmatpush.msra.mxu3 %v219_v39  ;;  %v283_v53 = vld [vmem:[%s1749_s5 + $0x270] sm:$0xff]  ;;  %v651_v39 = vld [vmem:[%s1755_s11 + $0x28] sm:$0xff] }
  0x57   :  { %492 = vmatpush.msra.mxu2 %v296_v21  ;;  %471 = vmatpush.msra.mxu1 %v236_v24  ;;  %v220_v41 = vld [vmem:[%s1749_s5 + $0x78] sm:$0xff]  ;;  %v279_v54 = vld [vmem:[%s1749_s5 + $0x250] sm:$0xff]  ;;  %v654_v24 = vld [vmem:[%s1755_s11 + $0x40] sm:$0xff] }
  0x58   :  { %v276_v42 = vld [vmem:[%s1749_s5 + $0x238] sm:$0xff]  ;;  %451 = vmatpush.msra.mxu0 %v299_v40  ;;  %436 = vmatpush.msra.mxu3 %v215_v43  ;;  %v275_v55 = vld [vmem:[%s1749_s5 + $0x230] sm:$0xff]  ;;  %v650_v43 = vld [vmem:[%s1755_s11 + $0x20] sm:$0xff] }
  0x59   :  { %493 = vmatpush.msra.mxu2 %v292_v25  ;;  %472 = vmatpush.msra.mxu1 %v232_v28  ;;  %v216_v45 = vld [vmem:[%s1749_s5 + $0x58] sm:$0xff]  ;;  %v271_v56 = vld [vmem:[%s1749_s5 + $0x210] sm:$0xff] }
  0x5a   :  { %v272_v46 = vld [vmem:[%s1749_s5 + $0x218] sm:$0xff]  ;;  %452 = vmatpush.msra.mxu0 %v295_v44  ;;  %437 = vmatpush.msra.mxu3 %v211_v47  ;;  %v583_v4 = vld [vmem:[%s1751_s7 + $0x70] sm:$0xff] }
  0x5b   :  { %494 = vmatpush.msra.mxu2 %v288_v29  ;;  %473 = vmatpush.msra.mxu1 %v228_v33  ;;  %v212_v49 = vld [vmem:[%s1749_s5 + $0x38] sm:$0xff]  ;;  %v660_v5 = vld [vmem:[%s1755_s11 + $0x70] sm:$0xff] }
  0x5c   :  { %453 = vmatpush.msra.mxu0 %v291_v48  ;;  %v208_v52 = vld [vmem:[%s1749_s5 + $0x18] sm:$0xff]  ;;  %438 = vmatpush.msra.mxu3 %v207_v50  ;;  %v579_v15 = vld [vmem:[%s1751_s7 + $0x50] sm:$0xff]  ;;  %s769_s5 = sshll.u32 %s1760_s16, 4  ;;  %s770_s5 = int_to_ptr.hbm [resolvable:$true] %s769_s5 }
  0x5d   :  { %495 = vmatpush.msra.mxu2 %v284_v34  ;;  %474 = vmatpush.msra.mxu1 %v224_v37  ;;  %v584_v2 = vld [vmem:[%s1751_s7 + $0x78] sm:$0xff]  ;;  %v656_v16 = vld [vmem:[%s1755_s11 + $0x50] sm:$0xff] }
  0x5e   :  { %454 = vmatpush.msra.mxu0 %v287_v51  ;;  %v661_v3 = vld [vmem:[%s1755_s11 + $0x78] sm:$0xff]  ;;  %v575_v32 = vld [vmem:[%s1751_s7 + $0x30] sm:$0xff]  ;;  %v570_v51 = vld [vmem:[%s1751_s7 + $0x8] sm:$0xff] }
  0x5f   :  { %496 = vmatpush.msra.mxu2 %v280_v38  ;;  %475 = vmatpush.msra.mxu1 %v220_v41  ;;  %v580_v12 = vld [vmem:[%s1751_s7 + $0x58] sm:$0xff]  ;;  %v652_v33 = vld [vmem:[%s1755_s11 + $0x30] sm:$0xff]  ;;  %v574_v38 = vld [vmem:[%s1751_s7 + $0x28] sm:$0xff] }
  0x60   :  { %379 = vmatmul.f32.vlgmr.msrb.gmra.mxu0 %v204_v30  ;;  %v657_v13 = vld [vmem:[%s1755_s11 + $0x58] sm:$0xff]  ;;  %v571_v48 = vld [vmem:[%s1751_s7 + $0x10] sm:$0xff] }
  0x61   :  { %497 = vmatpush.msra.mxu2 %v276_v42  ;;  %476 = vmatpush.msra.mxu1 %v216_v45  ;;  %v576_v27 = vld [vmem:[%s1751_s7 + $0x38] sm:$0xff]  ;;  %v573_v42 = vld [vmem:[%s1751_s7 + $0x20] sm:$0xff] }
  0x62   :  { %455 = vmatpush.msra.mxu0 %v283_v53  ;;  %v653_v28 = vld [vmem:[%s1755_s11 + $0x38] sm:$0xff]  ;;  %v569_v53 = vld [vmem:[%s1751_s7] sm:$0xff] }
  0x63   :  { %498 = vmatpush.msra.mxu2 %v272_v46  ;;  %477 = vmatpush.msra.mxu1 %v212_v49  ;;  %v572_v44 = vld [vmem:[%s1751_s7 + $0x18] sm:$0xff]  ;;  %v648_v49 = vld [vmem:[%s1755_s11 + $0x10] sm:$0xff]  ;;  %s758_s7 = sshll.u32 %s1759_s15, 4  ;;  %s759_s7 = int_to_ptr.hbm [resolvable:$true] %s758_s7 }
  0x64   :  { %499 = vmatmul.f32.vlgmr.msra.gmra.mxu2 %v204_v30  ;;  %456 = vmatpush.msra.mxu0 %v279_v54  ;;  %v649_v45 = vld [vmem:[%s1755_s11 + $0x18] sm:$0xff]  ;;  %v646_v54 = vld [vmem:[%s1755_s11] sm:$0xff] }
  0x65   :  { %478 = vmatpush.msra.mxu1 %v208_v52  ;;  %v647_v52 = vld [vmem:[%s1755_s11 + $0x8] sm:$0xff] }
  0x66   :  { %457 = vmatpush.msra.mxu0 %v275_v55 }
  0x68   :  { %458 = vmatpush.msra.mxu0 %v271_v56 }
  0x69   :  { %459 = vmatmul.f32.vlgmr.msra.gmra.mxu0 %v204_v30 }
  0x9a   :  { %v201_v63 = vpop.f32.mrf.mxu3 }
  0xa1   :  { %v141_v58 = vpop.f32.mrf.mxu0 }
  0xa2   :  { %v142_v59 = vadd.f32 %v814_v57, %v141_v58  ;;  %v161_v60 = vpop.f32.mrf.mxu1  ;;  %v337_v57 = vperm.slane %v1575_v8, 2  ;;  %v694_v58 = vld [vmem:[%s1757_s13 + $0x38] sm:$0xff] }
  0xa3   :  { %710 = vmatpush.msrb.mxu2 %v694_v58 }
  0xa4   :  { %v162_v61 = vadd.f32 %v161_v60, %v142_v59  ;;  %v693_v59 = vld [vmem:[%s1757_s13 + $0x30] sm:$0xff] }
  0xa5   :  { %711 = vmatpush.msrb.mxu2 %v693_v59 }
  0xa6   :  { %v181_v62 = vpop.f32.mrf.mxu2 }
  0xa7   :  { %v182_v0 = vadd.f32 %v181_v62, %v162_v61  ;;  %v617_v62 = vld [vmem:[%s1753_s9 + $0x38] sm:$0xff] }
  0xa8   :  { %634 = vmatpush.msrb.mxu0 %v617_v62  ;;  %v818_v62 = vld [vmem:[%s1758_s14] ss:$0 sm:$0xff] }
  0xa9   :  { %v202_v1 = vadd.f32 %v201_v63, %v182_v0  ;;  %v616_v63 = vld [vmem:[%s1753_s9 + $0x30] sm:$0xff] }
  0xaa   :  { %635 = vmatpush.msrb.mxu0 %v616_v63 }
  0xab   :  { %359 = vmatmul.f32.vlgmr.msrb.gmra.mxu3 %v202_v1  ;;  %399 = vmatmul.f32.vlgmr.msrb.gmra.mxu1 %v202_v1 }
  0xac   :  { %589 = vmatpush.msrb.mxu3 %v584_v2  ;;  %666 = vmatpush.msrb.mxu1 %v661_v3  ;;  %v692_v2 = vld [vmem:[%s1757_s13 + $0x28] sm:$0xff] }
  0xad   :  { %712 = vmatpush.msrb.mxu2 %v692_v2  ;;  %v817_v2 = vld [vmem:[#allocation2] ss:$0 sm:$0xff] }
  0xae   :  { %590 = vmatpush.msrb.mxu3 %v583_v4  ;;  %667 = vmatpush.msrb.mxu1 %v660_v5  ;;  %v615_v4 = vld [vmem:[%s1753_s9 + $0x28] sm:$0xff] }
  0xaf   :  { %636 = vmatpush.msrb.mxu0 %v615_v4 }
  0xb0   :  { %591 = vmatpush.msrb.mxu3 %v582_v6  ;;  %668 = vmatpush.msrb.mxu1 %v659_v7  ;;  %v691_v6 = vld [vmem:[%s1757_s13 + $0x20] sm:$0xff] }
  0xb1   :  { %713 = vmatpush.msrb.mxu2 %v691_v6 }
  0xb2   :  { %592 = vmatpush.msrb.mxu3 %v581_v9  ;;  %669 = vmatpush.msrb.mxu1 %v658_v10  ;;  %v690_v9 = vld [vmem:[%s1757_s13 + $0x18] sm:$0xff] }
  0xb3   :  { %439 = vmatmul.f32.vlgmr.msra.gmra.mxu3 %v202_v1  ;;  %479 = vmatmul.f32.vlgmr.msra.gmra.mxu1 %v202_v1 }
  0xb4   :  { %593 = vmatpush.msrb.mxu3 %v580_v12  ;;  %670 = vmatpush.msrb.mxu1 %v657_v13 }
  0xb5   :  { %714 = vmatpush.msrb.mxu2 %v690_v9 }
  0xb6   :  { %594 = vmatpush.msrb.mxu3 %v579_v15  ;;  %671 = vmatpush.msrb.mxu1 %v656_v16 }
  0xb8   :  { %595 = vmatpush.msrb.mxu3 %v578_v19  ;;  %672 = vmatpush.msrb.mxu1 %v655_v20 }
  0xba   :  { %596 = vmatpush.msrb.mxu3 %v577_v23  ;;  %673 = vmatpush.msrb.mxu1 %v654_v24 }
  0xbc   :  { %597 = vmatpush.msrb.mxu3 %v576_v27  ;;  %674 = vmatpush.msrb.mxu1 %v653_v28 }
  0xbe   :  { %598 = vmatpush.msrb.mxu3 %v575_v32  ;;  %675 = vmatpush.msrb.mxu1 %v652_v33 }
  0xc0   :  { %599 = vmatpush.msrb.mxu3 %v574_v38  ;;  %676 = vmatpush.msrb.mxu1 %v651_v39 }
  0xc2   :  { %600 = vmatpush.msrb.mxu3 %v573_v42  ;;  %677 = vmatpush.msrb.mxu1 %v650_v43 }
  0xc4   :  { %601 = vmatpush.msrb.mxu3 %v572_v44  ;;  %678 = vmatpush.msrb.mxu1 %v649_v45  ;;  %v689_v45 = vld [vmem:[%s1757_s13 + $0x10] sm:$0xff] }
  0xc5   :  { %715 = vmatpush.msrb.mxu2 %v689_v45 }
  0xc6   :  { %602 = vmatpush.msrb.mxu3 %v571_v48  ;;  %679 = vmatpush.msrb.mxu1 %v648_v49  ;;  %v613_v48 = vld [vmem:[%s1753_s9 + $0x18] sm:$0xff]  ;;  %v687_v49 = vld [vmem:[%s1757_s13] sm:$0xff] }
  0xc8   :  { %603 = vmatpush.msrb.mxu3 %v570_v51  ;;  %680 = vmatpush.msrb.mxu1 %v647_v52  ;;  %v611_v51 = vld [vmem:[%s1753_s9 + $0x8] sm:$0xff]  ;;  %v610_v52 = vld [vmem:[%s1753_s9] sm:$0xff] }
  0xca   :  { %604 = vmatpush.msrb.mxu3 %v569_v53  ;;  %681 = vmatpush.msrb.mxu1 %v646_v54  ;;  %v815_v53 = vld [vmem:[%s1756_s12] ss:$0 sm:$0xff] }
  0xd5   :  { %v420_v14 = vpop.f32.mrf.mxu2 }
  0xdd   :  { %v380_v30 = vpop.f32.mrf.mxu0 }
  0xe6   :  { %v460_v8 = vpop.f32.mrf.mxu0 }
  0xe7   :  { %v500_v35 = vpop.f32.mrf.mxu2 }
 0x128   :  { %v400_v17 = vpop.f32.mrf.mxu1 }
 0x129   :  { %v401_v18 = vadd.f32 %v400_v17, %v336_v11 }
 0x12b   :  { %v421_v21 = vadd.f32 %v420_v14, %v401_v18 }
 0x12d   :  { %v800_v25 = vmul.f32 -1.442695, %v421_v21 }
 0x12e   :  { %v360_v29 = vpop.f32.mrf.mxu3 }
 0x12f   :  { %819 = vpow2.f32 %v800_v25  ;;  %v361_v31 = vadd.f32 %v360_v29, %v335_v22  ;;  %v561_v29 = vld [vmem:[%s1746_s2] sm:$0x3] }
 0x130   :  { %v480_v34 = vpop.f32.mrf.mxu1 }
 0x131   :  { %v381_v36 = vadd.f32 %v380_v30, %v361_v31  ;;  %v481_v37 = vadd.f32 %v480_v34, %v338_v26 }
 0x133   :  { %v799_v40 = vmul.f32 -1.442695, %v381_v36  ;;  %v501_v41 = vadd.f32 %v500_v35, %v481_v37 }
 0x135   :  { %v820_v46 = vpop.eup %819  ;;  %821 = vpow2.f32 %v799_v40  ;;  %v801_v47 = vmul.f32 -1.442695, %v501_v41 }
 0x136   :  { %v1646_v50 = vadd.f32 1.0, %v820_v46  ;;  %v440_v61 = vpop.f32.mrf.mxu3  ;;  %v614_v46 = vld [vmem:[%s1753_s9 + $0x20] sm:$0xff] }
 0x137   :  { %823 = vpow2.f32 %v801_v47  ;;  %v441_v5 = vadd.f32 %v440_v61, %v337_v57  ;;  %v688_v47 = vld [vmem:[%s1757_s13 + $0x8] sm:$0xff]  ;;  %637 = vmatpush.msrb.mxu0 %v614_v46  ;;  %v816_v57 = vld [vmem:[%s1752_s8] ss:$0 sm:$0xff]  ;;  %v913_v61 = vmov 0  }
 0x138   :  { %825 = vrcp.f32 %v1646_v50  ;;  %v537_v16 = vand.u32 2147483648, %v1646_v50  ;;  %vm531_vm2 = vweird.f32 %v1646_v50  ;;  %v535_v19 = vand.u32 2147483647, %v1646_v50  ;;  %716 = vmatpush.msrb.mxu2 %v688_v47  ;;  %813 = vset.pattern.permute.xlu0 %v913_v61 }
 0x139   :  { %v461_v12 = vadd.f32 %v460_v8, %v441_v5  ;;  %638 = vmatpush.msrb.mxu0 %v613_v48  ;;  %v916_v5 = vmov 36.0  }
 0x13a   :  { %v538_v24 = vor.u32 1.1754944e-38, %v537_v16  ;;  %vm536_vm6 = vcmp.eq.f32.partialorder %v535_v19, 8.507059e+37  ;;  %717 = vmatpush.msrb.mxu2 %v687_v49 }
 0x13b   :  { %v822_v55 = vpop.eup %821 }
 0x13c   :  { %v506_v56 = vadd.f32 1.0, %v822_v55 }
 0x13d   :  { %v824_v60 = vpop.eup %823 }
 0x13e   :  { %v826_v0 = vpop.eup %825  ;;  %827 = vrcp.f32 %v506_v56  ;;  %v1674_v1 = vadd.f32 1.0, %v824_v60  ;;  %v518_v20 = vand.u32 2147483648, %v506_v56  ;;  %v516_v22 = vand.u32 2147483647, %v506_v56 }
 0x13f   :  { %v527_v3 = vmul.f32 %v826_v0, %v1646_v50  ;;  %vm532_vm1 = vweird.f32 %v826_v0  ;;  %vm512_vm5 = vweird.f32 %v506_v56  ;;  %v612_v50 = vld [vmem:[%s1753_s9 + $0x10] sm:$0xff] }
 0x140   :  { %829 = vrcp.f32 %v1674_v1  ;;  %vm533_vm3 = vmor %vm531_vm2, %vm532_vm1  ;;  %v519_v27 = vor.u32 1.1754944e-38, %v518_v20  ;;  %vm517_vm8 = vcmp.eq.f32.partialorder %v516_v22, 8.507059e+37  ;;  %v557_v38 = vand.u32 2147483648, %v1674_v1  ;;  %639 = vmatpush.msrb.mxu0 %v612_v50 }
 0x141   :  { %v528_v7 = vsub.f32 1.0, %v527_v3  ;;  %831 = vtanh.f32 %v461_v12  ;;  %vm551_vm10 = vweird.f32 %v1674_v1  ;;  %v555_v39 = vand.u32 2147483647, %v1674_v1 }
 0x142   :  { %v558_v41 = vor.u32 1.1754944e-38, %v557_v38  ;;  %640 = vmatpush.msrb.mxu0 %v611_v51 }
 0x143   :  { %v529_v10 = vmul.f32 %v826_v0, %v528_v7  ;;  %vm556_vm12 = vcmp.eq.f32.partialorder %v555_v39, 8.507059e+37 }
 0x144   :  { %v828_v11 = vpop.eup %827  ;;  %641 = vmatpush.msrb.mxu0 %v610_v52 }
 0x145   :  { %v508_v13 = vmul.f32 %v828_v11, %v506_v56  ;;  %v530_v14 = vadd.f32 %v826_v0, %v529_v10  ;;  %vm513_vm4 = vweird.f32 %v828_v11 }
 0x146   :  { %v830_v15 = vpop.eup %829  ;;  %vm514_vm7 = vmor %vm512_vm5, %vm513_vm4 }
 0x147   :  { %v509_v17 = vsub.f32 1.0, %v508_v13  ;;  %v547_v18 = vmul.f32 %v830_v15, %v1674_v1  ;;  %v534_v23 = vsel %vm533_vm3, %v826_v0, %v530_v14  ;;  %v832_v31 = vpop.eup %831  ;;  %vm552_vm9 = vweird.f32 %v830_v15 }
 0x148   :  { %v539_v28 = vsel %vm536_vm6, %v538_v24, %v534_v23  ;;  %vm553_vm11 = vmor %vm551_vm10, %vm552_vm9 }
 0x149   :  { %v510_v21 = vmul.f32 %v828_v11, %v509_v17  ;;  %v548_v25 = vsub.f32 1.0, %v547_v18  ;;  %v562_v34 = vmul.f32 %v561_v29, %v539_v28 }
 0x14b   :  { %v511_v26 = vadd.f32 %v828_v11, %v510_v21  ;;  %v549_v33 = vmul.f32 %v830_v15, %v548_v25 }
 0x14d   :  { %v515_v30 = vsel %vm514_vm7, %v828_v11, %v511_v26  ;;  %v550_v37 = vadd.f32 %v830_v15, %v549_v33 }
 0x14e   :  { %v520_v32 = vsel %vm517_vm8, %v519_v27, %v515_v30 }
 0x14f   :  { %v563_v35 = vmul.f32 %v832_v31, %v520_v32  ;;  %v554_v40 = vsel %vm553_vm11, %v830_v15, %v550_v37 }
 0x150   :  { %v559_v43 = vsel %vm556_vm12, %v558_v41, %v554_v40 }
 0x151   :  { %v564_v36 = vadd.f32 %v563_v35, %v562_v34 }
 0x153   :  { %833 = vtanh.f32 %v564_v36  ;;  %568 = vst [vmem:[#allocation7] sm:$0x3] %v564_v36 }
 0x154   :  { %835 = vrcp.f32 %v916_v5 }
 0x159   :  { %v834_v42 = vpop.eup %833 }
 0x15a   :  { %v566_v44 = vmul.f32 %v834_v42, %v559_v43  ;;  %v836_v6 = vpop.eup %835 }
 0x15b   :  { %v734_v7 = vmul.f32 36.0, %v836_v6  ;;  %vm738_vm15 = vweird.f32 %v836_v6 }
 0x15c   :  { %605 = vmatmul.f32.vlgmr.msrb.gmra.mxu3 %v566_v44  ;;  %567 = vst [vmem:[#allocation5] sm:$0x3] %v566_v44  ;;  %682 = vmatmul.f32.vlgmr.msrb.gmra.mxu1 %v566_v44 }
 0x15d   :  { %772 = dma.vmem_to_hbm [thread:$0]  %s768_s23, 32, %s770_s5, [#allocation6]   ;;  %v735_v8 = vsub.f32 1.0, %v734_v7 }
 0x15e   :  { %783 = dma.vmem_to_hbm [thread:$0]  %s779_s4, 32, %s781_s24, [#allocation6]  }
 0x15f   :  { %v736_v12 = vmul.f32 %v836_v6, %v735_v8 }
 0x161   :  { %v737_v15 = vadd.f32 %v836_v6, %v736_v12 }
 0x163   :  { %v739_v18 = vsel %vm738_vm15, %v836_v6, %v737_v15 }
 0x1d9   :  { %v683_v54 = vpop.f32.mrf.mxu1 }
 0x1da   :  { %v684_v55 = vadd.f32 %v815_v53, %v683_v54 }
 0x1dc   :  { %v686_v56 = vmax.f32 %v684_v55, 0.0 }
 0x1de   :  { %803 = vmatmul.msk.f32.vlgmr.msrb.gmra.mxu2 %vm622_vm13, %v686_v56 }
 0x1df   :  { %v606_v58 = vpop.f32.mrf.mxu3 }
 0x1e0   :  { %v607_v59 = vadd.f32 %v816_v57, %v606_v58 }
 0x1e2   :  { %v609_v60 = vmax.f32 %v607_v59, 0.0 }
 0x1e4   :  { %802 = vmatmul.msk.f32.vlgmr.msrb.gmra.mxu0 %vm622_vm13, %v609_v60 }
 0x261   :  { %v719_v63 = vpop.f32.mrf.mxu2  ;;  %v643_v3 = vpop.f32.mrf.mxu0 }
 0x262   :  { %v720_v0 = vadd.f32 %v818_v62, %v719_v63  ;;  %v644_v4 = vadd.f32 %v817_v2, %v643_v3 }
 0x264   :  { %v723_v1 = vsel %vm722_vm14, %v720_v0, 0.0 }
 0x265   :  { %724 = vadd.xlane.f32.xlu0 %v723_v1 }
 0x279   :  { %746 = vperm.xlu0 %813, %v644_v4  }
 0x2d8   :  { %v725_v9 = vpop.xlane.xlu0 %724 }
 0x2d9   :  { %v726_v10 = vrot.slane %v725_v9, 4 }
 0x2db   :  { %v727_v11 = vadd.f32 %v726_v10, %v725_v9 }
 0x2dd   :  { %v728_v13 = vrot.slane %v727_v11, 2 }
 0x2df   :  { %v729_v14 = vadd.f32 %v728_v13, %v727_v11 }
 0x2e1   :  { %v730_v16 = vrot.slane %v729_v14, 1 }
 0x2e3   :  { %v731_v17 = vadd.f32 %v730_v16, %v729_v14 }
 0x2e5   :  { %804 = vpush %v731_v17 }
 0x2e6   :  { %806 = vpush %v739_v18 }
 0x2eb   :  { %v747_v21 = vpop.permute.xlu0 %746 }
 0x316   :  { %s805_s16 = spop %804 }
 0x317   :  { %s807_s17 = spop %806 }
 0x318   :  { %s741_s26 = smul.f32 %s807_s17, %s805_s16 }
 0x31a   :  { %v742_v19 = vstv %s741_s26 }
 0x31b   :  { %v743_v20 = vsub.f32 %v720_v0, %v742_v19 }
 0x31d   :  { %v749_v22 = vadd.f32 %v747_v21, %v743_v20 }
 0x31f   :  { %750 = vst.msk [vmem:[#allocation3] sm:$0x3] %vm722_vm14, %v749_v22 }
 0x320   :  { %761 = dma.vmem_to_hbm [thread:$0]  %s757_s28, 32, %s759_s7, [#allocation4]  }
 0x321   :  { %909 = dma.done.wait [#allocation4], 32  }
 0x322   :  { %910 = vsyncadd [#allocation4], 4294967264 }
 0x323   :  { %911 = dma.done.wait [#allocation6], 64  }
 0x324   :  { %912 = vsyncadd [#allocation6], 4294967232 }
 0x325   :  { %796 = vsyncpa [#allocation4], 1 }
 0x326   :  { %797 = vsyncpa [#allocation6], 1 }

</bundles_post_ra>
